<compile_context>
chip_gen: v7x
topology: tpu7x:2x2x1
jax: 0.10.0
libtpu: 0.0.40
codegen_flags: <defaults>
</compile_context>

<pallas_src>
import math
import functools

import jax
import jax.numpy as jnp
from jax.experimental import pallas as pl
from jax.experimental.pallas import tpu as pltpu


def _layer_norm(x, gamma, beta, eps):
    mean = jnp.mean(x, axis=-1, keepdims=True)
    var = jnp.mean(jnp.square(x - mean), axis=-1, keepdims=True)
    return (x - mean) * jax.lax.rsqrt(var + eps) * gamma + beta


def _encoder_layer_kernel(
    lens_ref,                                   # scalar prefetch: [B] int32 (SMEM)
    src_ref,                                    # [Bb, S, hid] f32
    wqkv_ref, bqkv_ref,                         # [hid, 3*hid] bf16, [1, 3*hid] f32
    wo_ref, bo_ref,                             # [hid, hid] bf16, [1, hid] f32
    ln1g_ref, ln1b_ref,                         # [1, hid] f32
    w1_ref, b1_ref,                             # [hid, pf] bf16, [1, pf] f32
    w2_ref, b2_ref,                             # [pf, hid] bf16, [1, hid] f32
    ln2g_ref, ln2b_ref,                         # [1, hid] f32
    out_ref,                                    # [Bb, S, hid] f32
    *, n_heads, head_dim, eps, block_b,
):
    b0 = pl.program_id(0) * block_b

    x3 = src_ref[...]                           # [Bb, S, hid] f32
    Bb, S, hid = x3.shape
    rows = Bb * S
    x = x3.reshape(rows, hid)

    # ---- fused (pre-scaled) Q/K/V projection: one bf16 MXU matmul ----
    qkv = (
        jnp.dot(x.astype(jnp.bfloat16), wqkv_ref[...],
                preferred_element_type=jnp.float32)
        + bqkv_ref[...]
    ).reshape(Bb, S, 3 * hid)                   # [Bb, S, 3*hid] f32

    # ---- padding mask from scalar-prefetched key lengths (built on VPU) ----
    kpos = jax.lax.broadcasted_iota(jnp.int32, (Bb, S, S), 2)
    klen = jnp.stack(
        [jnp.full((S, S), lens_ref[b0 + i], jnp.int32) for i in range(block_b)],
        axis=0,
    )                                           # [Bb, S, S]
    valid = kpos < klen                         # [Bb, Sq, Sk] bool

    # ---- per-head attention with fc_o folded in (lane-dense accumulation) ----
    neg_big = jnp.float32(-10000000000.0)
    attn_out = jnp.zeros((rows, hid), jnp.float32)
    for h in range(n_heads):                    # static unroll; fine for small n_heads
        lo = h * head_dim
        q = qkv[:, :, lo:lo + head_dim].astype(jnp.bfloat16)
        k = qkv[:, :, hid + lo:hid + lo + head_dim].astype(jnp.bfloat16)
        v = qkv[:, :, 2 * hid + lo:2 * hid + lo + head_dim].astype(jnp.bfloat16)

        energy = jnp.einsum("bqd,bkd->bqk", q, k,
                            preferred_element_type=jnp.float32)     # [Bb,Sq,Sk] f32
        energy = jnp.where(valid, energy, neg_big)
        e = jnp.exp(energy - jnp.max(energy, axis=-1, keepdims=True))
        attn = e * pl.reciprocal(jnp.sum(e, axis=-1, keepdims=True), approx=True)

        ctx = jnp.einsum("bqk,bkd->bqd", attn.astype(jnp.bfloat16), v,
                         preferred_element_type=jnp.float32)        # [Bb, S, hd]
        attn_out = attn_out + jnp.dot(
            ctx.reshape(rows, head_dim).astype(jnp.bfloat16),
            wo_ref[lo:lo + head_dim, :],
            preferred_element_type=jnp.float32)

    # ---- fc_o bias + residual + LayerNorm 1 (dropout = identity) ----
    y = _layer_norm(x + attn_out + bo_ref[...], ln1g_ref[...], ln1b_ref[...], eps)

    # ---- position-wise FFN + residual + LayerNorm 2 ----
    h1 = jnp.maximum(
        jnp.dot(y.astype(jnp.bfloat16), w1_ref[...],
                preferred_element_type=jnp.float32) + b1_ref[...],
        jnp.float32(0.0))
    h2 = jnp.dot(h1.astype(jnp.bfloat16), w2_ref[...],
                 preferred_element_type=jnp.float32) + b2_ref[...]
    z = _layer_norm(y + h2, ln2g_ref[...], ln2b_ref[...], eps)

    out_ref[...] = z.reshape(Bb, S, hid)


# ----------------------------------------------------------------------------
# One-time parameter preparation (fold scale, fuse QKV, cast weights to bf16)
# ----------------------------------------------------------------------------
def prepare_params(raw):
    hid, n_heads, pf = raw["hid_dim"], raw["n_heads"], raw["pf_dim"]
    head_dim = hid // n_heads
    inv_scale = jnp.float32(1.0 / math.sqrt(float(head_dim)))
    row = lambda v: v.reshape(1, -1).astype(jnp.float32)
    wqkv = jnp.concatenate(
        [raw["Wq"] * inv_scale, raw["Wk"], raw["Wv"]], axis=1).astype(jnp.bfloat16)
    bqkv = jnp.concatenate(
        [raw["bq"] * inv_scale, raw["bk"], raw["bv"]]
    ).reshape(1, 3 * hid).astype(jnp.float32)
    return dict(
        hid_dim=hid, n_heads=n_heads, pf_dim=pf, head_dim=head_dim,
        wqkv=wqkv, bqkv=bqkv,
        wo=raw["Wo"].astype(jnp.bfloat16), bo=row(raw["bo"]),
        ln1_g=row(raw["ln1_g"]), ln1_b=row(raw["ln1_b"]),
        w1=raw["W1"].astype(jnp.bfloat16), b1=row(raw["b1"]),
        w2=raw["W2"].astype(jnp.bfloat16), b2=row(raw["b2"]),
        ln2_g=row(raw["ln2_g"]), ln2_b=row(raw["ln2_b"]),
    )


def _pick_block_b(B, S, target_rows=128):
    bb = min(B, max(1, target_rows // S))       # aim for >=128 MXU rows per step
    while B % bb:                               # must divide the batch evenly
        bb -= 1
    return bb


def _vmem_limit_bytes(block_b, S, hid, pf):
    rows = block_b * S
    weights = 2 * (3 * hid * hid + hid * hid + 2 * hid * pf)          # bf16, single copy
    small = 4 * (3 * hid + 7 * hid + pf)                              # biases + LN params
    io = 2 * 2 * rows * hid * 4                                       # double-buffered src/out tiles
    acts = 4 * (rows * 3 * hid + 3 * block_b * S * S + rows * pf + 5 * rows * hid)
    est = int(1.5 * (weights + small + io + acts))
    return max(32 * 1024 * 1024, min(64 * 1024 * 1024, est))


def encoder_layer(p, src, lens, block_b=None):
    """EncoderLayer forward (eval mode) as one fused Pallas kernel.

    p:    output of prepare_params().
    src:  [B, S, hid] float32
    lens: [B] int32 — valid key positions per batch (equivalent to a padding
          src_mask of shape [B,1,1,S] with mask[b, ..., k] = (k < lens[b])).
    returns: [B, S, hid] float32
    """
    hid, n_heads, pf, head_dim = p["hid_dim"], p["n_heads"], p["pf_dim"], p["head_dim"]
    B, S, _ = src.shape
    if block_b is None:
        block_b = _pick_block_b(B, S)
    # TODO(synk): on v7x prefer >= 2 (even) batch blocks so both TensorCores
    #   get work; with the tiny demo batch the whole batch is one block.

    kernel = functools.partial(
        _encoder_layer_kernel,
        n_heads=n_heads, head_dim=head_dim, eps=1e-5, block_b=block_b)

    # untiled, single resident VMEM copy (constant across the grid)
    vmem_spec = pl.BlockSpec(memory_space=pltpu.MemorySpace.VMEM)

    grid_spec = pltpu.PrefetchScalarGridSpec(
        num_scalar_prefetch=1,
        grid=(B // block_b,),
        in_specs=[
            pl.BlockSpec((block_b, S, hid), lambda i, lens_ref: (i, 0, 0)),  # src
            vmem_spec, vmem_spec,          # Wqkv, bqkv
            vmem_spec, vmem_spec,          # Wo, bo
            vmem_spec, vmem_spec,          # ln1 gamma, beta
            vmem_spec, vmem_spec,          # W1, b1
            vmem_spec, vmem_spec,          # W2, b2
            vmem_spec, vmem_spec,          # ln2 gamma, beta
        ],
        out_specs=pl.BlockSpec((block_b, S, hid), lambda i, lens_ref: (i, 0, 0)),
    )

    return pl.pallas_call(
        kernel,
        grid_spec=grid_spec,
        out_shape=jax.ShapeDtypeStruct((B, S, hid), jnp.float32),
        compiler_params=pltpu.CompilerParams(
            dimension_semantics=("parallel",),          # batch blocks across TCs (v7x)
            vmem_limit_bytes=_vmem_limit_bytes(block_b, S, hid, pf),
        ),
    )(
        lens.astype(jnp.int32),
        src.astype(jnp.float32),
        p["wqkv"], p["bqkv"],
        p["wo"], p["bo"],
        p["ln1_g"], p["ln1_b"],
        p["w1"], p["b1"],
        p["w2"], p["b2"],
        p["ln2_g"], p["ln2_b"],
    )


# ----------------------------------------------------------------------------
# Pure-JAX reference (mirrors the PyTorch EncoderLayer forward, eval mode, f32)
# ----------------------------------------------------------------------------
def reference(params, src, lens):
    hid_dim = params["hid_dim"]
    n_heads = params["n_heads"]
    head_dim = hid_dim // n_heads
    B, S, _ = src.shape

    mask = (jnp.arange(S)[None, :] < lens[:, None]).astype(jnp.int32)
    mask = mask[:, None, None, :]               # [B,1,1,Sk]

    Q = src @ params["Wq"] + params["bq"]
    K = src @ params["Wk"] + params["bk"]
    V = src @ params["Wv"] + params["bv"]

    split = lambda x: x.reshape(B, S, n_heads, head_dim).transpose(0, 2, 1, 3)
    Qh, Kh, Vh = split(Q), split(K), split(V)

    energy = jnp.einsum("bhqd,bhkd->bhqk", Qh, Kh) / math.sqrt(float(head_dim))
    energy = jnp.where(mask == 0, -10000000000.0, energy)
    attn = jax.nn.softmax(energy, axis=-1)
    x = jnp.einsum("bhqk,bhkd->bhqd", attn, Vh)
    x = x.transpose(0, 2, 1, 3).reshape(B, S, hid_dim)
    x = x @ params["Wo"] + params["bo"]

    def ln(v, g, b):
        mu = v.mean(-1, keepdims=True)
        var = ((v - mu) ** 2).mean(-1, keepdims=True)
        return (v - mu) / jnp.sqrt(var + 1e-5) * g + b

    y = ln(src + x, params["ln1_g"], params["ln1_b"])
    h = jnp.maximum(y @ params["W1"] + params["b1"], 0.0)
    h = h @ params["W2"] + params["b2"]
    return ln(y + h, params["ln2_g"], params["ln2_b"])


# ----------------------------------------------------------------------------
# Main
# ----------------------------------------------------------------------------
if __name__ == "__main__":
    B, S, hid_dim, n_heads, pf_dim = 2, 8, 32, 4, 64   # head_dim = 8

    key0 = jax.random.PRNGKey(0)
    ks = jax.random.split(key0, 20)

    def w(k, shape, scale=0.05):
        return jax.random.normal(k, shape, jnp.float32) * scale

    params = {
        "hid_dim": hid_dim, "n_heads": n_heads, "pf_dim": pf_dim,
        "Wq": w(ks[0], (hid_dim, hid_dim)), "bq": w(ks[1], (hid_dim,), 0.01),
        "Wk": w(ks[2], (hid_dim, hid_dim)), "bk": w(ks[3], (hid_dim,), 0.01),
        "Wv": w(ks[4], (hid_dim, hid_dim)), "bv": w(ks[5], (hid_dim,), 0.01),
        "Wo": w(ks[6], (hid_dim, hid_dim)), "bo": w(ks[7], (hid_dim,), 0.01),
        "W1": w(ks[8], (hid_dim, pf_dim)),  "b1": w(ks[9], (pf_dim,), 0.01),
        "W2": w(ks[10], (pf_dim, hid_dim)), "b2": w(ks[11], (hid_dim,), 0.01),
        "ln1_g": 1.0 + w(ks[12], (hid_dim,), 0.02), "ln1_b": w(ks[13], (hid_dim,), 0.02),
        "ln2_g": 1.0 + w(ks[14], (hid_dim,), 0.02), "ln2_b": w(ks[15], (hid_dim,), 0.02),
    }

    src = jax.random.normal(ks[16], (B, S, hid_dim), jnp.float32)
    # padding mask: batch 0 attends to all 8 keys, batch 1 only to the first 5
    lens = jnp.array([8, 5], dtype=jnp.int32)

    prepped = prepare_params(params)            # one-time weight prep (bf16, fused QKV)
    out = encoder_layer(prepped, src, lens)
    out = jax.block_until_ready(out)

    out_ref = reference(params, src, lens)
    assert out.shape == (B, S, hid_dim)
    # tolerance accounts for bf16 MXU operands and the approximate (EUP)
    # reciprocal in the softmax; accumulation / softmax / LayerNorm are f32.
    assert jnp.allclose(out, out_ref, atol=2e-2, rtol=2e-2), float(
        jnp.max(jnp.abs(out - out_ref))
    )

    print("KERNEL_OK")
</pallas_src>

<mosaic_0001>
module attributes {stable_mosaic.version = 11 : i64} {
  func.func @_encoder_layer_kernel(%arg0: i32, %arg1: memref<2xi32, #tpu.memory_space<smem>>, %arg2: memref<2x8x32xf32, #tpu.memory_space<vmem>>, %arg3: memref<32x96xbf16, #tpu.memory_space<vmem>>, %arg4: memref<1x96xf32, #tpu.memory_space<vmem>>, %arg5: memref<32x32xbf16, #tpu.memory_space<vmem>>, %arg6: memref<1x32xf32, #tpu.memory_space<vmem>>, %arg7: memref<1x32xf32, #tpu.memory_space<vmem>>, %arg8: memref<1x32xf32, #tpu.memory_space<vmem>>, %arg9: memref<32x64xbf16, #tpu.memory_space<vmem>>, %arg10: memref<1x64xf32, #tpu.memory_space<vmem>>, %arg11: memref<64x32xbf16, #tpu.memory_space<vmem>>, %arg12: memref<1x32xf32, #tpu.memory_space<vmem>>, %arg13: memref<1x32xf32, #tpu.memory_space<vmem>>, %arg14: memref<1x32xf32, #tpu.memory_space<vmem>>, %arg15: memref<2x8x32xf32, #tpu.memory_space<vmem>>) attributes {dimension_semantics = [#tpu.dimension_semantics<parallel>], iteration_bounds = array<i64: 1>, scalar_prefetch = 1 : i64, scratch_operands = 0 : i64, tpu.core_type = #tpu.core_type<tc>, window_params = [{transform_indices = @transform_0, window_bounds = array<i64: 2, 8, 32>}, {pipeline_mode = #tpu.pipeline_mode<synchronous>, transform_indices = @transform_1, window_bounds = array<i64: 32, 96>}, {pipeline_mode = #tpu.pipeline_mode<synchronous>, transform_indices = @transform_2, window_bounds = array<i64: 1, 96>}, {pipeline_mode = #tpu.pipeline_mode<synchronous>, transform_indices = @transform_3, window_bounds = array<i64: 32, 32>}, {pipeline_mode = #tpu.pipeline_mode<synchronous>, transform_indices = @transform_4, window_bounds = array<i64: 1, 32>}, {pipeline_mode = #tpu.pipeline_mode<synchronous>, transform_indices = @transform_5, window_bounds = array<i64: 1, 32>}, {pipeline_mode = #tpu.pipeline_mode<synchronous>, transform_indices = @transform_6, window_bounds = array<i64: 1, 32>}, {pipeline_mode = #tpu.pipeline_mode<synchronous>, transform_indices = @transform_7, window_bounds = array<i64: 32, 64>}, {pipeline_mode = #tpu.pipeline_mode<synchronous>, transform_indices = @transform_8, window_bounds = array<i64: 1, 64>}, {pipeline_mode = #tpu.pipeline_mode<synchronous>, transform_indices = @transform_9, window_bounds = array<i64: 64, 32>}, {pipeline_mode = #tpu.pipeline_mode<synchronous>, transform_indices = @transform_10, window_bounds = array<i64: 1, 32>}, {pipeline_mode = #tpu.pipeline_mode<synchronous>, transform_indices = @transform_11, window_bounds = array<i64: 1, 32>}, {pipeline_mode = #tpu.pipeline_mode<synchronous>, transform_indices = @transform_12, window_bounds = array<i64: 1, 32>}, {transform_indices = @transform_13, window_bounds = array<i64: 2, 8, 32>}]} {
    %c2_i32 = arith.constant 2 : i32
    %0 = arith.muli %arg0, %c2_i32 : i32
    %c0 = arith.constant 0 : index
    %c0_0 = arith.constant 0 : index
    %c0_1 = arith.constant 0 : index
    %1 = vector.load %arg2[%c0, %c0_0, %c0_1] : memref<2x8x32xf32, #tpu.memory_space<vmem>>, vector<2x8x32xf32>
    %2 = vector.shape_cast %1 : vector<2x8x32xf32> to vector<16x32xf32>
    %3 = arith.truncf %2 : vector<16x32xf32> to vector<16x32xbf16>
    %c0_2 = arith.constant 0 : index
    %c0_3 = arith.constant 0 : index
    %4 = vector.load %arg3[%c0_2, %c0_3] : memref<32x96xbf16, #tpu.memory_space<vmem>>, vector<32x96xbf16>
    %cst = arith.constant dense<0.000000e+00> : vector<16x96xf32>
    %5 = tpu.matmul %3, %4, %cst {dimension_numbers = #tpu.dot_dimension_numbers<[1], [0], [0], [1], [0, 0, 1, 1], [], []>} : vector<16x32xbf16>, vector<32x96xbf16>, vector<16x96xf32> -> vector<16x96xf32>
    %c0_4 = arith.constant 0 : index
    %c0_5 = arith.constant 0 : index
    %6 = vector.load %arg4[%c0_4, %c0_5] : memref<1x96xf32, #tpu.memory_space<vmem>>, vector<1x96xf32>
    %7 = vector.broadcast %6 : vector<1x96xf32> to vector<16x96xf32>
    %8 = arith.addf %5, %7 : vector<16x96xf32>
    %9 = vector.shape_cast %8 : vector<16x96xf32> to vector<2x8x96xf32>
    %10 = tpu.iota {dimensions = array<i32: 2>} : vector<2x8x8xi32>
    %c0_i32 = arith.constant 0 : i32
    %11 = arith.addi %0, %c0_i32 : i32
    %12 = arith.index_cast %11 : i32 to index
    %13 = memref.load %arg1[%12] : memref<2xi32, #tpu.memory_space<smem>>
    %14 = vector.broadcast %13 : i32 to vector<8x8xi32>
    %c1_i32 = arith.constant 1 : i32
    %15 = arith.addi %0, %c1_i32 : i32
    %16 = arith.index_cast %15 : i32 to index
    %17 = memref.load %arg1[%16] : memref<2xi32, #tpu.memory_space<smem>>
    %18 = vector.broadcast %17 : i32 to vector<8x8xi32>
    %19 = vector.shape_cast %14 : vector<8x8xi32> to vector<1x8x8xi32>
    %20 = vector.shape_cast %18 : vector<8x8xi32> to vector<1x8x8xi32>
    %21 = tpu.concatenate %19, %20 in 0 : vector<1x8x8xi32>, vector<1x8x8xi32> -> vector<2x8x8xi32>
    %22 = arith.cmpi slt, %10, %21 : vector<2x8x8xi32>
    %cst_6 = arith.constant 0.000000e+00 : f32
    %23 = vector.broadcast %cst_6 : f32 to vector<16x32xf32>
    %24 = vector.extract_strided_slice %9 {offsets = [0, 0, 0], sizes = [2, 8, 8], strides = [1, 1, 1]} : vector<2x8x96xf32> to vector<2x8x8xf32>
    %25 = arith.truncf %24 : vector<2x8x8xf32> to vector<2x8x8xbf16>
    %26 = vector.extract_strided_slice %9 {offsets = [0, 0, 32], sizes = [2, 8, 8], strides = [1, 1, 1]} : vector<2x8x96xf32> to vector<2x8x8xf32>
    %27 = arith.truncf %26 : vector<2x8x8xf32> to vector<2x8x8xbf16>
    %28 = vector.extract_strided_slice %9 {offsets = [0, 0, 64], sizes = [2, 8, 8], strides = [1, 1, 1]} : vector<2x8x96xf32> to vector<2x8x8xf32>
    %29 = arith.truncf %28 : vector<2x8x8xf32> to vector<2x8x8xbf16>
    "tpu.trace_start"() <{level = 10 : i32, message = "bqd,bkd->bqk"}> : () -> ()
    %cst_7 = arith.constant dense<0.000000e+00> : vector<2x8x8xf32>
    %30 = tpu.matmul %25, %27, %cst_7 {dimension_numbers = #tpu.dot_dimension_numbers<[2], [2], [1], [1], [0, 0, 0, 1, 1, 1], [0], [0]>} : vector<2x8x8xbf16>, vector<2x8x8xbf16>, vector<2x8x8xf32> -> vector<2x8x8xf32>
    %cst_8 = arith.constant -1.000000e+10 : f32
    "tpu.trace_stop"() : () -> ()
    %31 = vector.broadcast %cst_8 : f32 to vector<2x8x8xf32>
    %32 = arith.select %22, %30, %31 : vector<2x8x8xi1>, vector<2x8x8xf32>
    %cst_9 = arith.constant dense<0xFF800000> : vector<2x8xf32>
    %33 = vector.multi_reduction <maximumf>, %32, %cst_9 [2] : vector<2x8x8xf32> to vector<2x8xf32>
    %34 = vector.shape_cast %33 : vector<2x8xf32> to vector<2x8x1xf32>
    %35 = vector.broadcast %34 : vector<2x8x1xf32> to vector<2x8x8xf32>
    %36 = arith.subf %32, %35 : vector<2x8x8xf32>
    %37 = math.exp %36 : vector<2x8x8xf32>
    %cst_10 = arith.constant dense<0.000000e+00> : vector<2x8xf32>
    %38 = vector.multi_reduction <add>, %37, %cst_10 [2] : vector<2x8x8xf32> to vector<2x8xf32>
    %39 = vector.shape_cast %38 : vector<2x8xf32> to vector<2x8x1xf32>
    %40 = tpu.reciprocal %39 {approx = true} : vector<2x8x1xf32> -> vector<2x8x1xf32>
    %41 = vector.broadcast %40 : vector<2x8x1xf32> to vector<2x8x8xf32>
    %42 = arith.mulf %37, %41 : vector<2x8x8xf32>
    %43 = arith.truncf %42 : vector<2x8x8xf32> to vector<2x8x8xbf16>
    "tpu.trace_start"() <{level = 10 : i32, message = "bqk,bkd->bqd"}> : () -> ()
    %cst_11 = arith.constant dense<0.000000e+00> : vector<2x8x8xf32>
    %44 = tpu.matmul %43, %29, %cst_11 {dimension_numbers = #tpu.dot_dimension_numbers<[2], [1], [1], [2], [0, 0, 0, 1, 1, 2], [0], [0]>} : vector<2x8x8xbf16>, vector<2x8x8xbf16>, vector<2x8x8xf32> -> vector<2x8x8xf32>
    "tpu.trace_stop"() : () -> ()
    %45 = vector.shape_cast %44 : vector<2x8x8xf32> to vector<16x8xf32>
    %46 = arith.truncf %45 : vector<16x8xf32> to vector<16x8xbf16>
    %c0_12 = arith.constant 0 : index
    %c0_13 = arith.constant 0 : index
    %47 = vector.load %arg5[%c0_12, %c0_13] : memref<32x32xbf16, #tpu.memory_space<vmem>>, vector<8x32xbf16>
    %cst_14 = arith.constant dense<0.000000e+00> : vector<16x32xf32>
    %48 = tpu.matmul %46, %47, %cst_14 {dimension_numbers = #tpu.dot_dimension_numbers<[1], [0], [0], [1], [0, 0, 1, 1], [], []>} : vector<16x8xbf16>, vector<8x32xbf16>, vector<16x32xf32> -> vector<16x32xf32>
    %49 = arith.addf %23, %48 : vector<16x32xf32>
    %50 = vector.extract_strided_slice %9 {offsets = [0, 0, 8], sizes = [2, 8, 8], strides = [1, 1, 1]} : vector<2x8x96xf32> to vector<2x8x8xf32>
    %51 = arith.truncf %50 : vector<2x8x8xf32> to vector<2x8x8xbf16>
    %52 = vector.extract_strided_slice %9 {offsets = [0, 0, 40], sizes = [2, 8, 8], strides = [1, 1, 1]} : vector<2x8x96xf32> to vector<2x8x8xf32>
    %53 = arith.truncf %52 : vector<2x8x8xf32> to vector<2x8x8xbf16>
    %54 = vector.extract_strided_slice %9 {offsets = [0, 0, 72], sizes = [2, 8, 8], strides = [1, 1, 1]} : vector<2x8x96xf32> to vector<2x8x8xf32>
    %55 = arith.truncf %54 : vector<2x8x8xf32> to vector<2x8x8xbf16>
    "tpu.trace_start"() <{level = 10 : i32, message = "bqd,bkd->bqk"}> : () -> ()
    %cst_15 = arith.constant dense<0.000000e+00> : vector<2x8x8xf32>
    %56 = tpu.matmul %51, %53, %cst_15 {dimension_numbers = #tpu.dot_dimension_numbers<[2], [2], [1], [1], [0, 0, 0, 1, 1, 1], [0], [0]>} : vector<2x8x8xbf16>, vector<2x8x8xbf16>, vector<2x8x8xf32> -> vector<2x8x8xf32>
    %cst_16 = arith.constant -1.000000e+10 : f32
    "tpu.trace_stop"() : () -> ()
    %57 = vector.broadcast %cst_16 : f32 to vector<2x8x8xf32>
    %58 = arith.select %22, %56, %57 : vector<2x8x8xi1>, vector<2x8x8xf32>
    %cst_17 = arith.constant dense<0xFF800000> : vector<2x8xf32>
    %59 = vector.multi_reduction <maximumf>, %58, %cst_17 [2] : vector<2x8x8xf32> to vector<2x8xf32>
    %60 = vector.shape_cast %59 : vector<2x8xf32> to vector<2x8x1xf32>
    %61 = vector.broadcast %60 : vector<2x8x1xf32> to vector<2x8x8xf32>
    %62 = arith.subf %58, %61 : vector<2x8x8xf32>
    %63 = math.exp %62 : vector<2x8x8xf32>
    %cst_18 = arith.constant dense<0.000000e+00> : vector<2x8xf32>
    %64 = vector.multi_reduction <add>, %63, %cst_18 [2] : vector<2x8x8xf32> to vector<2x8xf32>
    %65 = vector.shape_cast %64 : vector<2x8xf32> to vector<2x8x1xf32>
    %66 = tpu.reciprocal %65 {approx = true} : vector<2x8x1xf32> -> vector<2x8x1xf32>
    %67 = vector.broadcast %66 : vector<2x8x1xf32> to vector<2x8x8xf32>
    %68 = arith.mulf %63, %67 : vector<2x8x8xf32>
    %69 = arith.truncf %68 : vector<2x8x8xf32> to vector<2x8x8xbf16>
    "tpu.trace_start"() <{level = 10 : i32, message = "bqk,bkd->bqd"}> : () -> ()
    %cst_19 = arith.constant dense<0.000000e+00> : vector<2x8x8xf32>
    %70 = tpu.matmul %69, %55, %cst_19 {dimension_numbers = #tpu.dot_dimension_numbers<[2], [1], [1], [2], [0, 0, 0, 1, 1, 2], [0], [0]>} : vector<2x8x8xbf16>, vector<2x8x8xbf16>, vector<2x8x8xf32> -> vector<2x8x8xf32>
    "tpu.trace_stop"() : () -> ()
    %71 = vector.shape_cast %70 : vector<2x8x8xf32> to vector<16x8xf32>
    %72 = arith.truncf %71 : vector<16x8xf32> to vector<16x8xbf16>
    %c8 = arith.constant 8 : index
    %c0_20 = arith.constant 0 : index
    %73 = vector.load %arg5[%c8, %c0_20] : memref<32x32xbf16, #tpu.memory_space<vmem>>, vector<8x32xbf16>
    %cst_21 = arith.constant dense<0.000000e+00> : vector<16x32xf32>
    %74 = tpu.matmul %72, %73, %cst_21 {dimension_numbers = #tpu.dot_dimension_numbers<[1], [0], [0], [1], [0, 0, 1, 1], [], []>} : vector<16x8xbf16>, vector<8x32xbf16>, vector<16x32xf32> -> vector<16x32xf32>
    %75 = arith.addf %49, %74 : vector<16x32xf32>
    %76 = vector.extract_strided_slice %9 {offsets = [0, 0, 16], sizes = [2, 8, 8], strides = [1, 1, 1]} : vector<2x8x96xf32> to vector<2x8x8xf32>
    %77 = arith.truncf %76 : vector<2x8x8xf32> to vector<2x8x8xbf16>
    %78 = vector.extract_strided_slice %9 {offsets = [0, 0, 48], sizes = [2, 8, 8], strides = [1, 1, 1]} : vector<2x8x96xf32> to vector<2x8x8xf32>
    %79 = arith.truncf %78 : vector<2x8x8xf32> to vector<2x8x8xbf16>
    %80 = vector.extract_strided_slice %9 {offsets = [0, 0, 80], sizes = [2, 8, 8], strides = [1, 1, 1]} : vector<2x8x96xf32> to vector<2x8x8xf32>
    %81 = arith.truncf %80 : vector<2x8x8xf32> to vector<2x8x8xbf16>
    "tpu.trace_start"() <{level = 10 : i32, message = "bqd,bkd->bqk"}> : () -> ()
    %cst_22 = arith.constant dense<0.000000e+00> : vector<2x8x8xf32>
    %82 = tpu.matmul %77, %79, %cst_22 {dimension_numbers = #tpu.dot_dimension_numbers<[2], [2], [1], [1], [0, 0, 0, 1, 1, 1], [0], [0]>} : vector<2x8x8xbf16>, vector<2x8x8xbf16>, vector<2x8x8xf32> -> vector<2x8x8xf32>
    %cst_23 = arith.constant -1.000000e+10 : f32
    "tpu.trace_stop"() : () -> ()
    %83 = vector.broadcast %cst_23 : f32 to vector<2x8x8xf32>
    %84 = arith.select %22, %82, %83 : vector<2x8x8xi1>, vector<2x8x8xf32>
    %cst_24 = arith.constant dense<0xFF800000> : vector<2x8xf32>
    %85 = vector.multi_reduction <maximumf>, %84, %cst_24 [2] : vector<2x8x8xf32> to vector<2x8xf32>
    %86 = vector.shape_cast %85 : vector<2x8xf32> to vector<2x8x1xf32>
    %87 = vector.broadcast %86 : vector<2x8x1xf32> to vector<2x8x8xf32>
    %88 = arith.subf %84, %87 : vector<2x8x8xf32>
    %89 = math.exp %88 : vector<2x8x8xf32>
    %cst_25 = arith.constant dense<0.000000e+00> : vector<2x8xf32>
    %90 = vector.multi_reduction <add>, %89, %cst_25 [2] : vector<2x8x8xf32> to vector<2x8xf32>
    %91 = vector.shape_cast %90 : vector<2x8xf32> to vector<2x8x1xf32>
    %92 = tpu.reciprocal %91 {approx = true} : vector<2x8x1xf32> -> vector<2x8x1xf32>
    %93 = vector.broadcast %92 : vector<2x8x1xf32> to vector<2x8x8xf32>
    %94 = arith.mulf %89, %93 : vector<2x8x8xf32>
    %95 = arith.truncf %94 : vector<2x8x8xf32> to vector<2x8x8xbf16>
    "tpu.trace_start"() <{level = 10 : i32, message = "bqk,bkd->bqd"}> : () -> ()
    %cst_26 = arith.constant dense<0.000000e+00> : vector<2x8x8xf32>
    %96 = tpu.matmul %95, %81, %cst_26 {dimension_numbers = #tpu.dot_dimension_numbers<[2], [1], [1], [2], [0, 0, 0, 1, 1, 2], [0], [0]>} : vector<2x8x8xbf16>, vector<2x8x8xbf16>, vector<2x8x8xf32> -> vector<2x8x8xf32>
    "tpu.trace_stop"() : () -> ()
    %97 = vector.shape_cast %96 : vector<2x8x8xf32> to vector<16x8xf32>
    %98 = arith.truncf %97 : vector<16x8xf32> to vector<16x8xbf16>
    %c16 = arith.constant 16 : index
    %c0_27 = arith.constant 0 : index
    %99 = vector.load %arg5[%c16, %c0_27] : memref<32x32xbf16, #tpu.memory_space<vmem>>, vector<8x32xbf16>
    %cst_28 = arith.constant dense<0.000000e+00> : vector<16x32xf32>
    %100 = tpu.matmul %98, %99, %cst_28 {dimension_numbers = #tpu.dot_dimension_numbers<[1], [0], [0], [1], [0, 0, 1, 1], [], []>} : vector<16x8xbf16>, vector<8x32xbf16>, vector<16x32xf32> -> vector<16x32xf32>
    %101 = arith.addf %75, %100 : vector<16x32xf32>
    %102 = vector.extract_strided_slice %9 {offsets = [0, 0, 24], sizes = [2, 8, 8], strides = [1, 1, 1]} : vector<2x8x96xf32> to vector<2x8x8xf32>
    %103 = arith.truncf %102 : vector<2x8x8xf32> to vector<2x8x8xbf16>
    %104 = vector.extract_strided_slice %9 {offsets = [0, 0, 56], sizes = [2, 8, 8], strides = [1, 1, 1]} : vector<2x8x96xf32> to vector<2x8x8xf32>
    %105 = arith.truncf %104 : vector<2x8x8xf32> to vector<2x8x8xbf16>
    %106 = vector.extract_strided_slice %9 {offsets = [0, 0, 88], sizes = [2, 8, 8], strides = [1, 1, 1]} : vector<2x8x96xf32> to vector<2x8x8xf32>
    %107 = arith.truncf %106 : vector<2x8x8xf32> to vector<2x8x8xbf16>
    "tpu.trace_start"() <{level = 10 : i32, message = "bqd,bkd->bqk"}> : () -> ()
    %cst_29 = arith.constant dense<0.000000e+00> : vector<2x8x8xf32>
    %108 = tpu.matmul %103, %105, %cst_29 {dimension_numbers = #tpu.dot_dimension_numbers<[2], [2], [1], [1], [0, 0, 0, 1, 1, 1], [0], [0]>} : vector<2x8x8xbf16>, vector<2x8x8xbf16>, vector<2x8x8xf32> -> vector<2x8x8xf32>
    %cst_30 = arith.constant -1.000000e+10 : f32
    "tpu.trace_stop"() : () -> ()
    %109 = vector.broadcast %cst_30 : f32 to vector<2x8x8xf32>
    %110 = arith.select %22, %108, %109 : vector<2x8x8xi1>, vector<2x8x8xf32>
    %cst_31 = arith.constant dense<0xFF800000> : vector<2x8xf32>
    %111 = vector.multi_reduction <maximumf>, %110, %cst_31 [2] : vector<2x8x8xf32> to vector<2x8xf32>
    %112 = vector.shape_cast %111 : vector<2x8xf32> to vector<2x8x1xf32>
    %113 = vector.broadcast %112 : vector<2x8x1xf32> to vector<2x8x8xf32>
    %114 = arith.subf %110, %113 : vector<2x8x8xf32>
    %115 = math.exp %114 : vector<2x8x8xf32>
    %cst_32 = arith.constant dense<0.000000e+00> : vector<2x8xf32>
    %116 = vector.multi_reduction <add>, %115, %cst_32 [2] : vector<2x8x8xf32> to vector<2x8xf32>
    %117 = vector.shape_cast %116 : vector<2x8xf32> to vector<2x8x1xf32>
    %118 = tpu.reciprocal %117 {approx = true} : vector<2x8x1xf32> -> vector<2x8x1xf32>
    %119 = vector.broadcast %118 : vector<2x8x1xf32> to vector<2x8x8xf32>
    %120 = arith.mulf %115, %119 : vector<2x8x8xf32>
    %121 = arith.truncf %120 : vector<2x8x8xf32> to vector<2x8x8xbf16>
    "tpu.trace_start"() <{level = 10 : i32, message = "bqk,bkd->bqd"}> : () -> ()
    %cst_33 = arith.constant dense<0.000000e+00> : vector<2x8x8xf32>
    %122 = tpu.matmul %121, %107, %cst_33 {dimension_numbers = #tpu.dot_dimension_numbers<[2], [1], [1], [2], [0, 0, 0, 1, 1, 2], [0], [0]>} : vector<2x8x8xbf16>, vector<2x8x8xbf16>, vector<2x8x8xf32> -> vector<2x8x8xf32>
    "tpu.trace_stop"() : () -> ()
    %123 = vector.shape_cast %122 : vector<2x8x8xf32> to vector<16x8xf32>
    %124 = arith.truncf %123 : vector<16x8xf32> to vector<16x8xbf16>
    %c24 = arith.constant 24 : index
    %c0_34 = arith.constant 0 : index
    %125 = vector.load %arg5[%c24, %c0_34] : memref<32x32xbf16, #tpu.memory_space<vmem>>, vector<8x32xbf16>
    %cst_35 = arith.constant dense<0.000000e+00> : vector<16x32xf32>
    %126 = tpu.matmul %124, %125, %cst_35 {dimension_numbers = #tpu.dot_dimension_numbers<[1], [0], [0], [1], [0, 0, 1, 1], [], []>} : vector<16x8xbf16>, vector<8x32xbf16>, vector<16x32xf32> -> vector<16x32xf32>
    %127 = arith.addf %101, %126 : vector<16x32xf32>
    %128 = arith.addf %2, %127 : vector<16x32xf32>
    %c0_36 = arith.constant 0 : index
    %c0_37 = arith.constant 0 : index
    %129 = vector.load %arg6[%c0_36, %c0_37] : memref<1x32xf32, #tpu.memory_space<vmem>>, vector<1x32xf32>
    %130 = vector.broadcast %129 : vector<1x32xf32> to vector<16x32xf32>
    %131 = arith.addf %128, %130 : vector<16x32xf32>
    %c0_38 = arith.constant 0 : index
    %c0_39 = arith.constant 0 : index
    %132 = vector.load %arg7[%c0_38, %c0_39] : memref<1x32xf32, #tpu.memory_space<vmem>>, vector<1x32xf32>
    %c0_40 = arith.constant 0 : index
    %c0_41 = arith.constant 0 : index
    %133 = vector.load %arg8[%c0_40, %c0_41] : memref<1x32xf32, #tpu.memory_space<vmem>>, vector<1x32xf32>
    %cst_42 = arith.constant dense<0.000000e+00> : vector<16xf32>
    %134 = vector.multi_reduction <add>, %131, %cst_42 [1] : vector<16x32xf32> to vector<16xf32>
    %135 = vector.shape_cast %134 : vector<16xf32> to vector<16x1xf32>
    %cst_43 = arith.constant 3.200000e+01 : f32
    %136 = vector.broadcast %cst_43 : f32 to vector<16x1xf32>
    %137 = arith.divf %135, %136 : vector<16x1xf32>
    %138 = vector.broadcast %137 : vector<16x1xf32> to vector<16x32xf32>
    %139 = arith.subf %131, %138 : vector<16x32xf32>
    %140 = arith.mulf %139, %139 : vector<16x32xf32>
    %cst_44 = arith.constant dense<0.000000e+00> : vector<16xf32>
    %141 = vector.multi_reduction <add>, %140, %cst_44 [1] : vector<16x32xf32> to vector<16xf32>
    %142 = vector.shape_cast %141 : vector<16xf32> to vector<16x1xf32>
    %cst_45 = arith.constant 3.200000e+01 : f32
    %143 = vector.broadcast %cst_45 : f32 to vector<16x1xf32>
    %144 = arith.divf %142, %143 : vector<16x1xf32>
    %145 = vector.broadcast %137 : vector<16x1xf32> to vector<16x32xf32>
    %146 = arith.subf %131, %145 : vector<16x32xf32>
    %cst_46 = arith.constant 9.99999974E-6 : f32
    %147 = vector.broadcast %cst_46 : f32 to vector<16x1xf32>
    %148 = arith.addf %144, %147 : vector<16x1xf32>
    %149 = math.rsqrt %148 : vector<16x1xf32>
    %150 = vector.broadcast %149 : vector<16x1xf32> to vector<16x32xf32>
    %151 = arith.mulf %146, %150 : vector<16x32xf32>
    %152 = vector.broadcast %132 : vector<1x32xf32> to vector<16x32xf32>
    %153 = arith.mulf %151, %152 : vector<16x32xf32>
    %154 = vector.broadcast %133 : vector<1x32xf32> to vector<16x32xf32>
    %155 = arith.addf %153, %154 : vector<16x32xf32>
    %156 = arith.truncf %155 : vector<16x32xf32> to vector<16x32xbf16>
    %c0_47 = arith.constant 0 : index
    %c0_48 = arith.constant 0 : index
    %157 = vector.load %arg9[%c0_47, %c0_48] : memref<32x64xbf16, #tpu.memory_space<vmem>>, vector<32x64xbf16>
    %cst_49 = arith.constant dense<0.000000e+00> : vector<16x64xf32>
    %158 = tpu.matmul %156, %157, %cst_49 {dimension_numbers = #tpu.dot_dimension_numbers<[1], [0], [0], [1], [0, 0, 1, 1], [], []>} : vector<16x32xbf16>, vector<32x64xbf16>, vector<16x64xf32> -> vector<16x64xf32>
    %c0_50 = arith.constant 0 : index
    %c0_51 = arith.constant 0 : index
    %159 = vector.load %arg10[%c0_50, %c0_51] : memref<1x64xf32, #tpu.memory_space<vmem>>, vector<1x64xf32>
    %160 = vector.broadcast %159 : vector<1x64xf32> to vector<16x64xf32>
    %161 = arith.addf %158, %160 : vector<16x64xf32>
    %cst_52 = arith.constant 0.000000e+00 : f32
    %162 = vector.broadcast %cst_52 : f32 to vector<16x64xf32>
    %163 = arith.maximumf %161, %162 : vector<16x64xf32>
    %164 = arith.truncf %163 : vector<16x64xf32> to vector<16x64xbf16>
    %c0_53 = arith.constant 0 : index
    %c0_54 = arith.constant 0 : index
    %165 = vector.load %arg11[%c0_53, %c0_54] : memref<64x32xbf16, #tpu.memory_space<vmem>>, vector<64x32xbf16>
    %cst_55 = arith.constant dense<0.000000e+00> : vector<16x32xf32>
    %166 = tpu.matmul %164, %165, %cst_55 {dimension_numbers = #tpu.dot_dimension_numbers<[1], [0], [0], [1], [0, 0, 1, 1], [], []>} : vector<16x64xbf16>, vector<64x32xbf16>, vector<16x32xf32> -> vector<16x32xf32>
    %c0_56 = arith.constant 0 : index
    %c0_57 = arith.constant 0 : index
    %167 = vector.load %arg12[%c0_56, %c0_57] : memref<1x32xf32, #tpu.memory_space<vmem>>, vector<1x32xf32>
    %168 = vector.broadcast %167 : vector<1x32xf32> to vector<16x32xf32>
    %169 = arith.addf %166, %168 : vector<16x32xf32>
    %170 = arith.addf %155, %169 : vector<16x32xf32>
    %c0_58 = arith.constant 0 : index
    %c0_59 = arith.constant 0 : index
    %171 = vector.load %arg13[%c0_58, %c0_59] : memref<1x32xf32, #tpu.memory_space<vmem>>, vector<1x32xf32>
    %c0_60 = arith.constant 0 : index
    %c0_61 = arith.constant 0 : index
    %172 = vector.load %arg14[%c0_60, %c0_61] : memref<1x32xf32, #tpu.memory_space<vmem>>, vector<1x32xf32>
    %cst_62 = arith.constant dense<0.000000e+00> : vector<16xf32>
    %173 = vector.multi_reduction <add>, %170, %cst_62 [1] : vector<16x32xf32> to vector<16xf32>
    %174 = vector.shape_cast %173 : vector<16xf32> to vector<16x1xf32>
    %cst_63 = arith.constant 3.200000e+01 : f32
    %175 = vector.broadcast %cst_63 : f32 to vector<16x1xf32>
    %176 = arith.divf %174, %175 : vector<16x1xf32>
    %177 = vector.broadcast %176 : vector<16x1xf32> to vector<16x32xf32>
    %178 = arith.subf %170, %177 : vector<16x32xf32>
    %179 = arith.mulf %178, %178 : vector<16x32xf32>
    %cst_64 = arith.constant dense<0.000000e+00> : vector<16xf32>
    %180 = vector.multi_reduction <add>, %179, %cst_64 [1] : vector<16x32xf32> to vector<16xf32>
    %181 = vector.shape_cast %180 : vector<16xf32> to vector<16x1xf32>
    %cst_65 = arith.constant 3.200000e+01 : f32
    %182 = vector.broadcast %cst_65 : f32 to vector<16x1xf32>
    %183 = arith.divf %181, %182 : vector<16x1xf32>
    %184 = vector.broadcast %176 : vector<16x1xf32> to vector<16x32xf32>
    %185 = arith.subf %170, %184 : vector<16x32xf32>
    %cst_66 = arith.constant 9.99999974E-6 : f32
    %186 = vector.broadcast %cst_66 : f32 to vector<16x1xf32>
    %187 = arith.addf %183, %186 : vector<16x1xf32>
    %188 = math.rsqrt %187 : vector<16x1xf32>
    %189 = vector.broadcast %188 : vector<16x1xf32> to vector<16x32xf32>
    %190 = arith.mulf %185, %189 : vector<16x32xf32>
    %191 = vector.broadcast %171 : vector<1x32xf32> to vector<16x32xf32>
    %192 = arith.mulf %190, %191 : vector<16x32xf32>
    %193 = vector.broadcast %172 : vector<1x32xf32> to vector<16x32xf32>
    %194 = arith.addf %192, %193 : vector<16x32xf32>
    %195 = vector.shape_cast %194 : vector<16x32xf32> to vector<2x8x32xf32>
    %c0_67 = arith.constant 0 : index
    %c0_68 = arith.constant 0 : index
    %c0_69 = arith.constant 0 : index
    %196 = vector.load %arg15[%c0_67, %c0_68, %c0_69] : memref<2x8x32xf32, #tpu.memory_space<vmem>>, vector<2x8x32xf32>
    tpu.vector_store %arg15[%c0_67, %c0_68, %c0_69], %195 {strides = array<i32>} : memref<2x8x32xf32, #tpu.memory_space<vmem>>, vector<2x8x32xf32>,
    return
  }
  func.func @transform_0(%arg0: i32, %arg1: memref<2xi32, #tpu.memory_space<smem>>) -> (i32, i32, i32) {
    %c0_i32 = arith.constant 0 : i32
    %c0_i32_0 = arith.constant 0 : i32
    %c0_i32_1 = arith.constant 0 : i32
    return %arg0, %c0_i32, %c0_i32_0 : i32, i32, i32
  }
  func.func @transform_1(%arg0: i32, %arg1: memref<2xi32, #tpu.memory_space<smem>>) -> (i32, i32) {
    %c0_i32 = arith.constant 0 : i32
    %c0_i32_0 = arith.constant 0 : i32
    %c0_i32_1 = arith.constant 0 : i32
    return %c0_i32, %c0_i32_0 : i32, i32
  }
  func.func @transform_2(%arg0: i32, %arg1: memref<2xi32, #tpu.memory_space<smem>>) -> (i32, i32) {
    %c0_i32 = arith.constant 0 : i32
    %c0_i32_0 = arith.constant 0 : i32
    %c0_i32_1 = arith.constant 0 : i32
    return %c0_i32, %c0_i32_0 : i32, i32
  }
  func.func @transform_3(%arg0: i32, %arg1: memref<2xi32, #tpu.memory_space<smem>>) -> (i32, i32) {
    %c0_i32 = arith.constant 0 : i32
    %c0_i32_0 = arith.constant 0 : i32
    %c0_i32_1 = arith.constant 0 : i32
    return %c0_i32, %c0_i32_0 : i32, i32
  }
  func.func @transform_4(%arg0: i32, %arg1: memref<2xi32, #tpu.memory_space<smem>>) -> (i32, i32) {
    %c0_i32 = arith.constant 0 : i32
    %c0_i32_0 = arith.constant 0 : i32
    %c0_i32_1 = arith.constant 0 : i32
    return %c0_i32, %c0_i32_0 : i32, i32
  }
  func.func @transform_5(%arg0: i32, %arg1: memref<2xi32, #tpu.memory_space<smem>>) -> (i32, i32) {
    %c0_i32 = arith.constant 0 : i32
    %c0_i32_0 = arith.constant 0 : i32
    %c0_i32_1 = arith.constant 0 : i32
    return %c0_i32, %c0_i32_0 : i32, i32
  }
  func.func @transform_6(%arg0: i32, %arg1: memref<2xi32, #tpu.memory_space<smem>>) -> (i32, i32) {
    %c0_i32 = arith.constant 0 : i32
    %c0_i32_0 = arith.constant 0 : i32
    %c0_i32_1 = arith.constant 0 : i32
    return %c0_i32, %c0_i32_0 : i32, i32
  }
  func.func @transform_7(%arg0: i32, %arg1: memref<2xi32, #tpu.memory_space<smem>>) -> (i32, i32) {
    %c0_i32 = arith.constant 0 : i32
    %c0_i32_0 = arith.constant 0 : i32
    %c0_i32_1 = arith.constant 0 : i32
    return %c0_i32, %c0_i32_0 : i32, i32
  }
  func.func @transform_8(%arg0: i32, %arg1: memref<2xi32, #tpu.memory_space<smem>>) -> (i32, i32) {
    %c0_i32 = arith.constant 0 : i32
    %c0_i32_0 = arith.constant 0 : i32
    %c0_i32_1 = arith.constant 0 : i32
    return %c0_i32, %c0_i32_0 : i32, i32
  }
  func.func @transform_9(%arg0: i32, %arg1: memref<2xi32, #tpu.memory_space<smem>>) -> (i32, i32) {
    %c0_i32 = arith.constant 0 : i32
    %c0_i32_0 = arith.constant 0 : i32
    %c0_i32_1 = arith.constant 0 : i32
    return %c0_i32, %c0_i32_0 : i32, i32
  }
  func.func @transform_10(%arg0: i32, %arg1: memref<2xi32, #tpu.memory_space<smem>>) -> (i32, i32) {
    %c0_i32 = arith.constant 0 : i32
    %c0_i32_0 = arith.constant 0 : i32
    %c0_i32_1 = arith.constant 0 : i32
    return %c0_i32, %c0_i32_0 : i32, i32
  }
  func.func @transform_11(%arg0: i32, %arg1: memref<2xi32, #tpu.memory_space<smem>>) -> (i32, i32) {
    %c0_i32 = arith.constant 0 : i32
    %c0_i32_0 = arith.constant 0 : i32
    %c0_i32_1 = arith.constant 0 : i32
    return %c0_i32, %c0_i32_0 : i32, i32
  }
  func.func @transform_12(%arg0: i32, %arg1: memref<2xi32, #tpu.memory_space<smem>>) -> (i32, i32) {
    %c0_i32 = arith.constant 0 : i32
    %c0_i32_0 = arith.constant 0 : i32
    %c0_i32_1 = arith.constant 0 : i32
    return %c0_i32, %c0_i32_0 : i32, i32
  }
  func.func @transform_13(%arg0: i32, %arg1: memref<2xi32, #tpu.memory_space<smem>>) -> (i32, i32, i32) {
    %c0_i32 = arith.constant 0 : i32
    %c0_i32_0 = arith.constant 0 : i32
    %c0_i32_1 = arith.constant 0 : i32
    return %arg0, %c0_i32, %c0_i32_0 : i32, i32, i32
  }
}

</mosaic_0001>

<bundles_post_ra>
// kernel: tpu_custom_call.1
= control target key start
LH: loop header
LB: loop body
LE: loop exit
PB: predicated region body
PF: predicated region fallthrough
CT: control target
= control target key end

     0   :  { %s2293_s0 = inlined_call_operand.hbm [shape: s32[2], index: 0, kind: input, shape index: {}]   ;;  %s2294_s1 = inlined_call_operand.vmem [shape: f32[2,8,32], index: 1, kind: input, shape index: {}]   ;;  %s2295_s2 = inlined_call_operand.vmem [shape: bf16[32,96], index: 2, kind: input, shape index: {}]   ;;  %s2296_s3 = inlined_call_operand.vmem [shape: f32[1,96], index: 3, kind: input, shape index: {}]   ;;  %s2297_s4 = inlined_call_operand.vmem [shape: bf16[32,32], index: 4, kind: input, shape index: {}]   ;;  %s2298_s5 = inlined_call_operand.vmem [shape: f32[1,32], index: 5, kind: input, shape index: {}]   ;;  %s2299_s6 = inlined_call_operand.vmem [shape: f32[1,32], index: 6, kind: input, shape index: {}]   ;;  %s2300_s7 = inlined_call_operand.vmem [shape: f32[1,32], index: 7, kind: input, shape index: {}]   ;;  %s2301_s8 = inlined_call_operand.hbm [shape: bf16[32,64], index: 8, kind: input, shape index: {}]   ;;  %s2302_s9 = inlined_call_operand.vmem [shape: f32[1,64], index: 9, kind: input, shape index: {}]   ;;  %s2303_s10 = inlined_call_operand.vmem [shape: bf16[64,32], index: 10, kind: input, shape index: {}]   ;;  %s2304_s11 = inlined_call_operand.vmem [shape: f32[1,32], index: 11, kind: input, shape index: {}]   ;;  %s2305_s12 = inlined_call_operand.vmem [shape: f32[1,32], index: 12, kind: input, shape index: {}]   ;;  %s2306_s13 = inlined_call_operand.vmem [shape: f32[1,32], index: 13, kind: input, shape index: {}]   ;;  %s2307_s14 = inlined_call_operand.hbm [shape: f32[2,8,32], index: 14, kind: output, shape index: {}]  }
   0x1   :  { %s1818_s15 = scalar_lea.hbm %s2293_s0, 16 }
   0x2   :  { %p1819_p0 = scmp.ne.s32.totalorder %s2293_s0, %s1818_s15  ;;  %p1822_p1 = scmp.lt.u32.totalorder %s1818_s15, %s2293_s0 }
   0x4   :  { %p1824_p2 = pnand %p1822_p1, %p1819_p0 }
   0x6   :  { %1827 = shalt.err (!%p1824_p2)  }
   0x7   :  { %s1878_s20 = smov [#allocation3]  }
   0x8   :  { %20 = dma.hbm_to_smem %s2293_s0, 16, %s1878_s20, [#allocation2] }
   0x9   :  { %1872 = dma.done.wait [#allocation2], 16 }
   0xa   :  { %1873 = vsyncadd [#allocation2], 4294967280 }
   0xb   :  { %22 = sfence }
   0xc   :  { %23 = vsyncpa [#allocation5], 0 }
   0xd   :  { %24 = vsyncpa [#allocation6], 0  ;;  %s1879_s23 = smov [#allocation4]   ;;  %s1828_s27 = scalar_lea.hbm %s2301_s8, 256 }
   0xe   :  { %s44_s24 = sshll.u32 %s1879_s23, 4  ;;  %p1829_p3 = scmp.ne.s32.totalorder %s2301_s8, %s1828_s27  ;;  %s45_s24 = int_to_ptr.vmem [resolvable:$true] %s44_s24 }
   0xf   :  { %p1832_p4 = scmp.lt.u32.totalorder %s1828_s27, %s2301_s8 }
  0x11   :  { %p1834_p5 = pnand %p1832_p4, %p1829_p3 }
  0x13   :  { %1837 = shalt.err (!%p1834_p5)
}
  0x14   :  { %s1838_s0 = scalar_lea.vmem %s45_s24, 256  ;;  %p1843_p7 = scmp.lt.s32.totalorder %s45_s24, %s45_s24 }
  0x15   :  { %p1839_p6 = scmp.ne.s32.totalorder %s45_s24, %s1838_s0  ;;  %p1844_p8 = scmp.lt.s32.totalorder %s1838_s0, %s1838_s0 }
  0x17   :  { %p1845_p9 = por %p1844_p8, %p1843_p7 }
  0x19   :  { %p1846_p10 = pnand %p1845_p9, %p1839_p6 }
  0x1b   :  { %1849 = shalt.err (!%p1846_p10)
}
  0x1c   :  { %s1880_s16 = smov 64   ;;  %s1881_s17 = smov 4  }
  0x1d   :  { %50 = dma.hbm_to_vmem [thread:$0]  %s2301_s8, 256, %s45_s24, [#allocation5], %s1880_s16, %s1880_s16, %s1881_s17  }
  0x1e   :  { %1874 = dma.done.wait [#allocation5], 256  }
  0x1f   :  { %1875 = vsyncadd [#allocation5], 4294967040  ;;  %v1882_v0 = vmov 0.0   ;;  %vm1883_vm0 = vmmov 0   ;;  %v1770_v1 = vld [vmem:[%s2295_s2] sm:$0xff]   ;;  %v1771_v2 = vld [vmem:[%s2295_s2 + $0x8] sm:$0xff]   ;;  %v137_v19 = vlaneseq }
  0x20   :  { %1603 = vmatprep.subr.bf16.mxu1 %v1882_v0  ;;  %1607 = vmatprep.mubr.msk.bf16.mxu1 %vm1883_vm0, %v1882_v0  ;;  %v2013_v3 = vld [vmem:[%s2294_s1] sm:$0xff]  ;;  %v2018_v4 = vld [vmem:[%s2294_s1 + $0x8] sm:$0xff]  ;;  %vm92_vm1 = vcmask 261120   ;;  %s1884_s1 = smov 96   ;;  %vm151_vm2 = vcmask 64512   ;;  %s1516_s28 = sld [smem:[#allocation3 + $0x1]] }
  0x21   :  { %1617 = vmatprep.subr.bf16.mxu0 %v1882_v0  ;;  %1619 = vmatprep.mubr.msk.bf16.mxu0 %vm1883_vm0, %v1882_v0  ;;  %v68_v5 = vpack.c.bf16 %v2018_v4, %v2013_v3  ;;  %v1512_v6 = vld [vmem:[%s2296_s3] ss:$0 sm:$0xff]  ;;  %s139_s3 = sld [smem:[#allocation3]]  ;;  %v138_v20 = vand.u32 127, %v137_v19  ;;  %s1885_s29 = smov 88   ;;  %vm278_vm5 = vcmask 1043456  }
  0x22   :  { %1604 = vmatpush3.bf16.msra.mxu1 %v1770_v1  ;;  %s1886_s30 = smov 120   ;;  %s1887_s15 = smov 56   ;;  %vm1402_vm6 = vcmask 523264  }
  0x23   :  { %1605 = vmatprep.subr.bf16.mxu1 %v1882_v0  ;;  %s1888_s0 = smov 112   ;;  %s1890_s21 = smov 48  }
  0x24   :  { %s1891_s8 = smov 72   ;;  %s1892_s22 = smov 104  }
  0x25   :  { %s1893_s25 = smov 40  }
  0x26   :  { %1606 = vmatpush3.bf16.msra.mxu1 %v1771_v2  ;;  %v143_v23 = vstv %s1516_s28 }
  0x27   :  { %1611 = vmatprep.subr.bf16.mxu1 %v1882_v0  ;;  %v142_v21 = vstv %s139_s3  ;;  %vm2055_vm4 = vcmp.lt.s32.totalorder %v138_v20, %v143_v23 }
  0x28   :  { %vm2048_vm3 = vcmp.lt.s32.totalorder %v138_v20, %v142_v21 }
  0x29   :  { %1608 = vmatmul.mubr.msk.bf16.vlgmr.msra.gmra.mrb[0].mxu1 %vm92_vm1, %v68_v5 }
  0x2a   :  { %1613 = vmatprep.mubr.msk.bf16.mxu1 %vm1883_vm0, %v1882_v0 }
  0xfc   :  { %v130_v7 = vpop.f32.mrb[0].mxu1 }
  0xfd   :  { %v131_v8 = vadd.f32 %v1512_v6, %v130_v7  ;;  %v1609_v9 = vpop.f32.mrb[1].mxu1 }
  0xfe   :  { %v133_v10 = vpop.f32.mrb[2].mxu1 }
  0xff   :  { %v2030_v11 = vpack.c.bf16 %v131_v8, %v131_v8  ;;  %v134_v12 = vadd.f32 %v1512_v6, %v133_v10  ;;  %v1610_v13 = vpop.f32.mrb[3].mxu1 }
 0x101   :  { %149 = vrot.lane.b32.xlu0 %v2030_v11, %s1884_s1  ;;  %v2033_v14 = vpack.c.bf16 %v134_v12, %v134_v12 }
 0x105   :  { %199 = vrot.lane.b32.xlu0 %v2033_v14, %s1884_s1 }
 0x173   :  { %v150_v15 = vpop.permute.xlu0 %149 }
 0x174   :  { %v156_v16 = vsel %vm151_vm2, %v150_v15, 0 }
 0x175   :  { %1612 = vmatpush3.bf16.xpose.msra.mxu1 %v156_v16 }
 0x176   :  { %1623 = vmatprep.subr.bf16.mxu1 %v1882_v0 }
 0x177   :  { %v200_v17 = vpop.permute.xlu0 %199 }
 0x178   :  { %v205_v18 = vsel %vm151_vm2, %v200_v17, 0 }
 0x179   :  { %1618 = vmatpush3.bf16.xpose.msra.mxu0 %v205_v18 }
 0x17a   :  { %1629 = vmatprep.subr.bf16.mxu0 %v1882_v0 }
 0x17c   :  { %1614 = vmatmul.mubr.msk.bf16.vlgmr.msra.gmra.mrb[4].mxu1 %vm151_vm2, %v2030_v11 }
 0x17d   :  { %1625 = vmatprep.mubr.msk.bf16.mxu1 %vm1883_vm0, %v1882_v0 }
 0x180   :  { %1620 = vmatmul.mubr.msk.bf16.vlgmr.msra.gmra.mrb[0].mxu0 %vm151_vm2, %v2033_v14 }
 0x181   :  { %1631 = vmatprep.mubr.msk.bf16.mxu0 %vm1883_vm0, %v1882_v0 }
 0x24f   :  { %v192_v24 = vpop.f32.mrb[4].mxu1 }
 0x250   :  { %v247_v25 = vsel %vm2048_vm3, %v192_v24, -1e+10  ;;  %v1615_v26 = vpop.f32.mrb[5].mxu1 }
 0x251   :  { %v195_v27 = vpop.f32.mrb[6].mxu1  ;;  %v249_v28 = vsel %vm151_vm2, %v247_v25, -inf }
 0x252   :  { %250 = vmax.xlane.f32.xlu1 %v249_v28  ;;  %v1616_v30 = vpop.f32.mrb[7].mxu1 }
 0x253   :  { %v241_v31 = vpop.f32.mrb[0].mxu0 }
 0x254   :  { %v248_v32 = vsel %vm2055_vm4, %v241_v31, -1e+10  ;;  %v1621_v33 = vpop.f32.mrb[1].mxu0 }
 0x255   :  { %v244_v34 = vpop.f32.mrb[2].mxu0  ;;  %v252_v35 = vsel %vm151_vm2, %v248_v32, -inf }
 0x256   :  { %v1622_v36 = vpop.f32.mrb[3].mxu0  ;;  %253 = vmax.xlane.f32.xlu1 %v252_v35 }
 0x267   :  { %273 = vrot.lane.b32.xlu1 %v2030_v11, %s1880_s16 }
 0x26b   :  { %322 = vrot.lane.b32.xlu1 %v2033_v14, %s1880_s16  ;;  %s1889_s16 = smov 80  }
 0x26f   :  { %374 = vrot.lane.b32.xlu1 %v2030_v11, %s1885_s29 }
 0x2df   :  { %v251_v37 = vpop.xlane.xlu1 %250 }
 0x2e0   :  { %v255_v38 = vsub.f32 %v247_v25, %v251_v37 }
 0x2e2   :  { %v257_v39 = vmul.f32 1.442695, %v255_v38 }
 0x2e3   :  { %v254_v40 = vpop.xlane.xlu1 %253 }
 0x2e4   :  { %1778 = vpow2.f32 %v257_v39  ;;  %v256_v41 = vsub.f32 %v248_v32, %v254_v40 }
 0x2e6   :  { %v259_v42 = vmul.f32 1.442695, %v256_v41 }
 0x2e7   :  { %v274_v43 = vpop.permute.xlu1 %273 }
 0x2e8   :  { %1780 = vpow2.f32 %v259_v42  ;;  %v280_v44 = vsel %vm278_vm5, %v274_v43, 0 }
 0x2e9   :  { %1624 = vmatpush3.bf16.msra.mxu1 %v280_v44 }
 0x2ea   :  { %1635 = vmatprep.subr.bf16.mxu1 %v1882_v0 }
 0x2eb   :  { %v323_v45 = vpop.permute.xlu1 %322 }
 0x2ec   :  { %v328_v46 = vsel %vm278_vm5, %v323_v45, 0 }
 0x2ed   :  { %1630 = vmatpush3.bf16.msra.mxu0 %v328_v46  ;;  %v595_v46 = vld [vmem:[%s2297_s4 + $0x4] sm:$0xf] }
 0x2ee   :  { %v1779_v47 = vpop.eup %1778  ;;  %1641 = vmatprep.subr.bf16.mxu0 %v1882_v0 }
 0x2ef   :  { %v261_v48 = vsel %vm151_vm2, %v1779_v47, 0.0  ;;  %v375_v51 = vpop.permute.xlu1 %374 }
 0x2f0   :  { %262 = vadd.xlane.f32.xlu0 %v261_v48  ;;  %v380_v58 = vsel %vm151_vm2, %v375_v51, 0  ;;  %v371_v51 = vld [vmem:[%s2297_s4] sm:$0xf] }
 0x2f2   :  { %v1781_v49 = vpop.eup %1780 }
 0x2f3   :  { %v264_v50 = vsel %vm151_vm2, %v1781_v49, 0.0 }
 0x2f4   :  { %265 = vadd.xlane.f32.xlu1 %v264_v50 }
 0x305   :  { %424 = vrot.lane.b32.xlu1 %v2033_v14, %s1885_s29 }
 0x306   :  { %372 = vrot.lane.b32.xlu0 %v2030_v11, %s1886_s30 }
 0x309   :  { %422 = vrot.lane.b32.xlu1 %v2033_v14, %s1886_s30 }
 0x37d   :  { %v263_v52 = vpop.xlane.xlu0 %262 }
 0x37e   :  { %1782 = vrcp.f32 %v263_v52 }
 0x381   :  { %v266_v53 = vpop.xlane.xlu1 %265  ;;  %v373_v63 = vpop.permute.xlu0 %372 }
 0x382   :  { %1784 = vrcp.f32 %v266_v53 }
 0x385   :  { %v425_v60 = vpop.permute.xlu1 %424 }
 0x386   :  { %v430_v62 = vsel %vm151_vm2, %v425_v60, 0 }
 0x388   :  { %v1783_v54 = vpop.eup %1782 }
 0x389   :  { %v269_v55 = vmul.f32 %v1783_v54, %v1779_v47  ;;  %v423_v1 = vpop.permute.xlu1 %422  ;;  %v647_v54 = vsel %vm278_vm5, %v371_v51, 0 }
 0x38b   :  { %v271_v56 = vpack.c.bf16 %v269_v55, %v269_v55 }
 0x38c   :  { %v1785_v57 = vpop.eup %1784 }
 0x38d   :  { %v270_v59 = vmul.f32 %v1785_v57, %v1781_v49  ;;  %1626 = vmatmul.mubr.msk.bf16.vlgmr.msra.gmra.mrb[8].mxu1 %vm151_vm2, %v271_v56  ;;  %v600_v49 = vsel %vm278_vm5, %v595_v46, 0 }
 0x38e   :  { %1636 = vmatpush3.bf16.xpose.msra.mxu1 %v380_v58  ;;  %1637 = vmatprep.mubr.msk.bf16.mxu1 %vm1883_vm0, %v1882_v0 }
 0x38f   :  { %v272_v61 = vpack.c.bf16 %v270_v59, %v270_v59  ;;  %1647 = vmatprep.subr.bf16.mxu1 %v1882_v0 }
 0x391   :  { %1632 = vmatmul.mubr.msk.bf16.vlgmr.msra.gmra.mrb[4].mxu0 %vm151_vm2, %v272_v61 }
 0x392   :  { %1642 = vmatpush3.bf16.xpose.msra.mxu0 %v430_v62  ;;  %1643 = vmatprep.mubr.msk.bf16.mxu0 %vm1883_vm0, %v1882_v0 }
 0x393   :  { %1653 = vmatprep.subr.bf16.mxu0 %v1882_v0 }
 0x395   :  { %1638 = vmatmul.mubr.msk.bf16.vlgmr.msra.gmra.mrb[12].mxu1 %vm151_vm2, %v373_v63 }
 0x396   :  { %1649 = vmatprep.mubr.msk.bf16.mxu1 %vm1883_vm0, %v1882_v0 }
 0x399   :  { %1644 = vmatmul.mubr.msk.bf16.vlgmr.msra.gmra.mrb[8].mxu0 %vm151_vm2, %v423_v1 }
 0x39a   :  { %1655 = vmatprep.mubr.msk.bf16.mxu0 %vm1883_vm0, %v1882_v0 }
 0x460   :  { %v2092_v2 = vpop.f32.mrb[8].mxu1 }
 0x461   :  { %v1627_v5 = vpop.f32.mrb[9].mxu1 }
 0x462   :  { %v319_v6 = vpop.f32.mrb[10].mxu1 }
 0x463   :  { %v1628_v7 = vpop.f32.mrb[11].mxu1 }
 0x464   :  { %v2094_v8 = vpop.f32.mrb[4].mxu0 }
 0x465   :  { %v370_v9 = vpack.c.bf16 %v2094_v8, %v2092_v2  ;;  %v1633_v10 = vpop.f32.mrb[5].mxu0 }
 0x466   :  { %v367_v12 = vpop.f32.mrb[6].mxu0 }
 0x467   :  { %v1634_v13 = vpop.f32.mrb[7].mxu0 }
 0x468   :  { %v416_v15 = vpop.f32.mrb[12].mxu1 }
 0x469   :  { %v472_v16 = vsel %vm2048_vm3, %v416_v15, -1e+10  ;;  %v1639_v17 = vpop.f32.mrb[13].mxu1 }
 0x46a   :  { %v419_v18 = vpop.f32.mrb[14].mxu1  ;;  %v474_v19 = vsel %vm151_vm2, %v472_v16, -inf }
 0x46b   :  { %475 = vmax.xlane.f32.xlu1 %v474_v19  ;;  %v1640_v20 = vpop.f32.mrb[15].mxu1 }
 0x46c   :  { %v466_v21 = vpop.f32.mrb[8].mxu0 }
 0x46d   :  { %v473_v23 = vsel %vm2055_vm4, %v466_v21, -1e+10  ;;  %v1645_v24 = vpop.f32.mrb[9].mxu0 }
 0x46e   :  { %v469_v25 = vpop.f32.mrb[10].mxu0  ;;  %v477_v26 = vsel %vm151_vm2, %v473_v23, -inf }
 0x46f   :  { %478 = vmax.xlane.f32.xlu0 %v477_v26  ;;  %v1646_v27 = vpop.f32.mrb[11].mxu0 }
 0x485   :  { %546 = vrot.lane.b32.xlu0 %v2033_v14, %s1887_s15 }
 0x489   :  { %690 = vrot.lane.b32.xlu0 %v2030_v11, %s1888_s0 }
 0x4f8   :  { %v476_v28 = vpop.xlane.xlu1 %475 }
 0x4f9   :  { %v480_v30 = vsub.f32 %v472_v16, %v476_v28 }
 0x4fb   :  { %v482_v31 = vmul.f32 1.442695, %v480_v30 }
 0x4fc   :  { %v479_v32 = vpop.xlane.xlu0 %478 }
 0x4fd   :  { %1786 = vpow2.f32 %v482_v31  ;;  %v481_v33 = vsub.f32 %v473_v23, %v479_v32 }
 0x4ff   :  { %v484_v34 = vmul.f32 1.442695, %v481_v33 }
 0x500   :  { %v547_v35 = vpop.permute.xlu0 %546 }
 0x501   :  { %1788 = vpow2.f32 %v484_v34  ;;  %v552_v36 = vsel %vm278_vm5, %v547_v35, 0 }
 0x502   :  { %1654 = vmatpush3.bf16.msra.mxu0 %v552_v36 }
 0x503   :  { %1665 = vmatprep.subr.bf16.mxu0 %v1882_v0 }
 0x504   :  { %v691_v10 = vpop.permute.xlu0 %690 }
 0x507   :  { %v1787_v37 = vpop.eup %1786 }
 0x508   :  { %v486_v38 = vsel %vm151_vm2, %v1787_v37, 0.0 }
 0x509   :  { %487 = vadd.xlane.f32.xlu1 %v486_v38 }
 0x50b   :  { %v1789_v39 = vpop.eup %1788 }
 0x50c   :  { %v489_v40 = vsel %vm151_vm2, %v1789_v39, 0.0 }
 0x50d   :  { %490 = vadd.xlane.f32.xlu1 %v489_v40 }
 0x51e   :  { %498 = vrot.lane.b32.xlu1 %v2030_v11, %s1887_s15 }
 0x522   :  { %692 = vrot.lane.b32.xlu1 %v2030_v11, %s1889_s16 }
 0x526   :  { %742 = vrot.lane.b32.xlu1 %v2033_v14, %s1889_s16 }
 0x52a   :  { %740 = vrot.lane.b32.xlu1 %v2033_v14, %s1888_s0 }
 0x596   :  { %v488_v41 = vpop.xlane.xlu1 %487 }
 0x597   :  { %1790 = vrcp.f32 %v488_v41 }
 0x59a   :  { %v491_v42 = vpop.xlane.xlu1 %490 }
 0x59b   :  { %1792 = vrcp.f32 %v491_v42 }
 0x59e   :  { %v499_v43 = vpop.permute.xlu1 %498 }
 0x59f   :  { %v504_v44 = vsel %vm278_vm5, %v499_v43, 0 }
 0x5a0   :  { %1648 = vmatpush3.bf16.msra.mxu1 %v504_v44 }
 0x5a1   :  { %v1791_v45 = vpop.eup %1790  ;;  %1659 = vmatprep.subr.bf16.mxu1 %v1882_v0 }
 0x5a2   :  { %v494_v47 = vmul.f32 %v1791_v45, %v1787_v37  ;;  %v693_v55 = vpop.permute.xlu1 %692 }
 0x5a3   :  { %v698_v6 = vsel %vm151_vm2, %v693_v55, 0 }
 0x5a4   :  { %v496_v48 = vpack.c.bf16 %v494_v47, %v494_v47 }
 0x5a5   :  { %v1793_v50 = vpop.eup %1792 }
 0x5a6   :  { %v495_v52 = vmul.f32 %v1793_v50, %v1789_v39  ;;  %1650 = vmatmul.mubr.msk.bf16.vlgmr.msra.gmra.mrb[16].mxu1 %vm151_vm2, %v496_v48  ;;  %v743_v56 = vpop.permute.xlu1 %742 }
 0x5a7   :  { %1660 = vmatpush3.bf16.msra.mxu1 %v600_v49  ;;  %1661 = vmatprep.mubr.msk.bf16.mxu1 %vm1883_vm0, %v1882_v0  ;;  %v748_v57 = vsel %vm151_vm2, %v743_v56, 0 }
 0x5a8   :  { %v497_v53 = vpack.c.bf16 %v495_v52, %v495_v52  ;;  %1671 = vmatprep.subr.bf16.mxu1 %v1882_v0 }
 0x5aa   :  { %1656 = vmatmul.mubr.msk.bf16.vlgmr.msra.gmra.mrb[12].mxu0 %vm151_vm2, %v497_v53  ;;  %v741_v58 = vpop.permute.xlu1 %740 }
 0x5ab   :  { %1666 = vmatpush3.bf16.msra.mxu0 %v647_v54  ;;  %1667 = vmatprep.mubr.msk.bf16.mxu0 %vm1883_vm0, %v1882_v0 }
 0x5ac   :  { %1677 = vmatprep.subr.bf16.mxu0 %v1882_v0 }
 0x5b2   :  { %1668 = vmatmul.mubr.msk.bf16.vlgmr.msra.gmra.mrb[16].mxu0 %vm151_vm2, %v370_v9 }
 0x5b3   :  { %1679 = vmatprep.mubr.msk.bf16.mxu0 %vm1883_vm0, %v1882_v0 }
 0x5b4   :  { %1678 = vmatpush3.bf16.xpose.msra.mxu0 %v748_v57 }
 0x5b5   :  { %1689 = vmatprep.subr.bf16.mxu0 %v1882_v0 }
 0x5bb   :  { %1680 = vmatmul.mubr.msk.bf16.vlgmr.msra.gmra.mrb[20].mxu0 %vm151_vm2, %v741_v58 }
 0x5bc   :  { %1691 = vmatprep.mubr.msk.bf16.mxu0 %vm1883_vm0, %v1882_v0 }
 0x679   :  { %v540_v59 = vpop.f32.mrb[16].mxu1 }
 0x67a   :  { %v1651_v60 = vpop.f32.mrb[17].mxu1 }
 0x67b   :  { %v543_v61 = vpop.f32.mrb[18].mxu1  ;;  %v913_v60 = vld [vmem:[%s2297_s4 + $0x8] sm:$0xf] }
 0x67c   :  { %v1652_v62 = vpop.f32.mrb[19].mxu1  ;;  %v918_v61 = vsel %vm278_vm5, %v913_v60, 0 }
 0x67d   :  { %v588_v63 = vpop.f32.mrb[12].mxu0 }
 0x67e   :  { %v594_v1 = vpack.c.bf16 %v588_v63, %v540_v59  ;;  %v1657_v2 = vpop.f32.mrb[13].mxu0 }
 0x67f   :  { %v591_v5 = vpop.f32.mrb[14].mxu0 }
 0x680   :  { %v1658_v7 = vpop.f32.mrb[15].mxu0  ;;  %1662 = vmatmul.mubr.msk.bf16.vlgmr.msra.gmra.mrb[20].mxu1 %vm151_vm2, %v594_v1 }
 0x681   :  { %1672 = vmatpush3.bf16.xpose.msra.mxu1 %v698_v6  ;;  %1673 = vmatprep.mubr.msk.bf16.mxu1 %vm1883_vm0, %v1882_v0 }
 0x682   :  { %1683 = vmatprep.subr.bf16.mxu1 %v1882_v0 }
 0x685   :  { %v683_v8 = vpop.f32.mrb[16].mxu0 }
 0x686   :  { %v1669_v9 = vpop.f32.mrb[17].mxu0 }
 0x687   :  { %v686_v12 = vpop.f32.mrb[18].mxu0 }
 0x688   :  { %v1670_v13 = vpop.f32.mrb[19].mxu0  ;;  %1674 = vmatmul.mubr.msk.bf16.vlgmr.msra.gmra.mrb[24].mxu1 %vm151_vm2, %v691_v10 }
 0x689   :  { %1685 = vmatprep.mubr.msk.bf16.mxu1 %vm1883_vm0, %v1882_v0 }
 0x68e   :  { %v784_v15 = vpop.f32.mrb[20].mxu0 }
 0x68f   :  { %v791_v16 = vsel %vm2055_vm4, %v784_v15, -1e+10  ;;  %v1681_v17 = vpop.f32.mrb[21].mxu0 }
 0x690   :  { %v787_v18 = vpop.f32.mrb[22].mxu0  ;;  %v795_v19 = vsel %vm151_vm2, %v791_v16, -inf }
 0x691   :  { %796 = vmax.xlane.f32.xlu1 %v795_v19  ;;  %v1682_v20 = vpop.f32.mrb[23].mxu0 }
 0x6a2   :  { %816 = vrot.lane.b32.xlu1 %v2030_v11, %s1890_s21 }
 0x6a6   :  { %965 = vrot.lane.b32.xlu1 %v2030_v11, %s1891_s8 }
 0x6aa   :  { %1015 = vrot.lane.b32.xlu1 %v2033_v14, %s1891_s8 }
 0x6ae   :  { %1013 = vrot.lane.b32.xlu1 %v2033_v14, %s1892_s22 }
 0x71e   :  { %v797_v21 = vpop.xlane.xlu1 %796 }
 0x71f   :  { %v799_v25 = vsub.f32 %v791_v16, %v797_v21 }
 0x721   :  { %v802_v26 = vmul.f32 1.442695, %v799_v25 }
 0x722   :  { %v817_v23 = vpop.permute.xlu1 %816 }
 0x723   :  { %v822_v24 = vsel %vm278_vm5, %v817_v23, 0  ;;  %1794 = vpow2.f32 %v802_v26 }
 0x724   :  { %1684 = vmatpush3.bf16.msra.mxu1 %v822_v24 }
 0x725   :  { %1695 = vmatprep.subr.bf16.mxu1 %v1882_v0 }
 0x726   :  { %v966_v55 = vpop.permute.xlu1 %965 }
 0x727   :  { %v971_v57 = vsel %vm151_vm2, %v966_v55, 0 }
 0x72a   :  { %v1016_v5 = vpop.permute.xlu1 %1015 }
 0x72b   :  { %v1021_v10 = vsel %vm151_vm2, %v1016_v5, 0 }
 0x72d   :  { %v1795_v39 = vpop.eup %1794 }
 0x72e   :  { %v807_v41 = vsel %vm151_vm2, %v1795_v39, 0.0  ;;  %v1014_v20 = vpop.permute.xlu1 %1013 }
 0x753   :  { %v636_v27 = vpop.f32.mrb[20].mxu1 }
 0x754   :  { %v2162_v28 = vadd.f32 %v683_v8, %v636_v27  ;;  %v1663_v30 = vpop.f32.mrb[21].mxu1 }
 0x755   :  { %v639_v31 = vpop.f32.mrb[22].mxu1 }
 0x756   :  { %v2164_v32 = vadd.f32 %v686_v12, %v639_v31  ;;  %v1664_v33 = vpop.f32.mrb[23].mxu1 }
 0x75b   :  { %v734_v34 = vpop.f32.mrb[24].mxu1 }
 0x75c   :  { %v790_v35 = vsel %vm2048_vm3, %v734_v34, -1e+10  ;;  %v1675_v36 = vpop.f32.mrb[25].mxu1 }
 0x75d   :  { %v737_v37 = vpop.f32.mrb[26].mxu1  ;;  %v792_v38 = vsel %vm151_vm2, %v790_v35, -inf }
 0x75e   :  { %793 = vmax.xlane.f32.xlu0 %v792_v38  ;;  %v1676_v40 = vpop.f32.mrb[27].mxu1 }
 0x762   :  { %808 = vadd.xlane.f32.xlu0 %v807_v41 }
 0x7eb   :  { %v794_v42 = vpop.xlane.xlu0 %793 }
 0x7ec   :  { %v798_v43 = vsub.f32 %v790_v35, %v794_v42 }
 0x7ee   :  { %v800_v44 = vmul.f32 1.442695, %v798_v43 }
 0x7ef   :  { %v809_v47 = vpop.xlane.xlu0 %808 }
 0x7f0   :  { %1796 = vpow2.f32 %v800_v44 }
 0x7f1   :  { %1798 = vrcp.f32 %v809_v47 }
 0x7fa   :  { %v1797_v45 = vpop.eup %1796 }
 0x7fb   :  { %v804_v46 = vsel %vm151_vm2, %v1797_v45, 0.0  ;;  %v1799_v48 = vpop.eup %1798 }
 0x7fc   :  { %805 = vadd.xlane.f32.xlu0 %v804_v46  ;;  %v813_v50 = vmul.f32 %v1799_v48, %v1795_v39  ;;  %v1186_v48 = vld [vmem:[%s2297_s4 + $0xc] sm:$0xf] }
 0x7fe   :  { %v815_v53 = vpack.c.bf16 %v813_v50, %v813_v50 }
 0x812   :  { %864 = vrot.lane.b32.xlu0 %v2033_v14, %s1890_s21 }
 0x816   :  { %963 = vrot.lane.b32.xlu0 %v2030_v11, %s1892_s22  ;;  %s1894_s22 = smov [#allocation7]  }
 0x817   :  { %s1500_s23 = sshll.u32 %s1894_s22, 4  ;;  %s1501_s23 = int_to_ptr.vmem [resolvable:$true] %s1500_s23 }
 0x818   :  { %s1850_s24 = scalar_lea.vmem %s1501_s23, 256  ;;  %p1855_p12 = scmp.lt.s32.totalorder %s1501_s23, %s1501_s23 }
 0x819   :  { %p1851_p11 = scmp.ne.s32.totalorder %s1501_s23, %s1850_s24  ;;  %p1856_p13 = scmp.lt.s32.totalorder %s1850_s24, %s1850_s24 }
 0x81b   :  { %p1857_p0 = por %p1856_p13, %p1855_p12 }
 0x81d   :  { %p1858_p1 = pnand %p1857_p0, %p1851_p11 }
 0x889   :  { %v806_v49 = vpop.xlane.xlu0 %805 }
 0x88a   :  { %1800 = vrcp.f32 %v806_v49  ;;  %v1191_v49 = vsel %vm278_vm5, %v1186_v48, 0  ;;  %v1540_v48 = vld [vmem:[%s2302_s9] ss:$0 sm:$0xff] }
 0x88d   :  { %v865_v51 = vpop.permute.xlu0 %864 }
 0x88e   :  { %v870_v52 = vsel %vm278_vm5, %v865_v51, 0 }
 0x88f   :  { %1690 = vmatpush3.bf16.msra.mxu0 %v870_v52 }
 0x890   :  { %1701 = vmatprep.subr.bf16.mxu0 %v1882_v0 }
 0x891   :  { %v964_v59 = vpop.permute.xlu0 %963 }
 0x892   :  { %1692 = vmatmul.mubr.msk.bf16.vlgmr.msra.gmra.mrb[24].mxu0 %vm151_vm2, %v815_v53 }
 0x893   :  { %1703 = vmatprep.mubr.msk.bf16.mxu0 %vm1883_vm0, %v1882_v0 }
 0x894   :  { %v1801_v54 = vpop.eup %1800 }
 0x895   :  { %v812_v56 = vmul.f32 %v1801_v54, %v1797_v45 }
 0x897   :  { %v814_v58 = vpack.c.bf16 %v812_v56, %v812_v56 }
 0x898   :  { %1702 = vmatpush3.bf16.xpose.msra.mxu0 %v971_v57 }
 0x899   :  { %1686 = vmatmul.mubr.msk.bf16.vlgmr.msra.gmra.mrb[28].mxu1 %vm151_vm2, %v814_v58  ;;  %1713 = vmatprep.subr.bf16.mxu0 %v1882_v0 }
 0x89a   :  { %1697 = vmatprep.mubr.msk.bf16.mxu1 %vm1883_vm0, %v1882_v0  ;;  %1696 = vmatpush3.bf16.msra.mxu1 %v918_v61 }
 0x89b   :  { %1707 = vmatprep.subr.bf16.mxu1 %v1882_v0 }
 0x89f   :  { %1704 = vmatmul.mubr.msk.bf16.vlgmr.msra.gmra.mrb[28].mxu0 %vm151_vm2, %v964_v59 }
 0x8a0   :  { %1715 = vmatprep.mubr.msk.bf16.mxu0 %vm1883_vm0, %v1882_v0 }
 0x965   :  { %v906_v62 = vpop.f32.mrb[24].mxu0 }
 0x966   :  { %v1693_v63 = vpop.f32.mrb[25].mxu0 }
 0x967   :  { %v909_v1 = vpop.f32.mrb[26].mxu0 }
 0x968   :  { %v1694_v2 = vpop.f32.mrb[27].mxu0 }
 0x96c   :  { %v858_v6 = vpop.f32.mrb[28].mxu1 }
 0x96d   :  { %v912_v7 = vpack.c.bf16 %v906_v62, %v858_v6  ;;  %v1687_v8 = vpop.f32.mrb[29].mxu1 }
 0x96e   :  { %v861_v9 = vpop.f32.mrb[30].mxu1 }
 0x96f   :  { %v1688_v12 = vpop.f32.mrb[31].mxu1  ;;  %1698 = vmatmul.mubr.msk.bf16.vlgmr.msra.gmra.mrb[32].mxu1 %vm151_vm2, %v912_v7  ;;  %v1537_v7 = vld [vmem:[%s2298_s5] ss:$0 sm:$0xff] }
 0x970   :  { %1708 = vmatpush3.bf16.xpose.msra.mxu1 %v1021_v10  ;;  %1709 = vmatprep.mubr.msk.bf16.mxu1 %vm1883_vm0, %v1882_v0 }
 0x971   :  { %1719 = vmatprep.subr.bf16.mxu1 %v1882_v0 }
 0x972   :  { %v1007_v13 = vpop.f32.mrb[28].mxu0 }
 0x973   :  { %v1063_v15 = vsel %vm2048_vm3, %v1007_v13, -1e+10  ;;  %v1705_v16 = vpop.f32.mrb[29].mxu0 }
 0x974   :  { %v1010_v17 = vpop.f32.mrb[30].mxu0  ;;  %v1065_v18 = vsel %vm151_vm2, %v1063_v15, -inf }
 0x975   :  { %1066 = vmax.xlane.f32.xlu0 %v1065_v18  ;;  %v1706_v19 = vpop.f32.mrb[31].mxu0 }
 0x977   :  { %1710 = vmatmul.mubr.msk.bf16.vlgmr.msra.gmra.mrb[36].mxu1 %vm151_vm2, %v1014_v20 }
 0x978   :  { %1721 = vmatprep.mubr.msk.bf16.mxu1 %vm1883_vm0, %v1882_v0 }
 0xa02   :  { %v1067_v21 = vpop.xlane.xlu0 %1066 }
 0xa03   :  { %v1071_v23 = vsub.f32 %v1063_v15, %v1067_v21 }
 0xa05   :  { %v1073_v24 = vmul.f32 1.442695, %v1071_v23 }
 0xa07   :  { %1802 = vpow2.f32 %v1073_v24 }
 0xa11   :  { %v1803_v25 = vpop.eup %1802 }
 0xa12   :  { %v1077_v22 = vsel %vm151_vm2, %v1803_v25, 0.0 }
 0xa13   :  { %1078 = vadd.xlane.f32.xlu0 %v1077_v22 }
 0xa42   :  { %v954_v26 = vpop.f32.mrb[32].mxu1 }
 0xa43   :  { %v961_v27 = vadd.f32 %v954_v26, %v2162_v28  ;;  %v1699_v30 = vpop.f32.mrb[33].mxu1  ;;  %v1772_v26 = vld [vmem:[#allocation4] sm:$0xff]  }
 0xa44   :  { %v957_v31 = vpop.f32.mrb[34].mxu1  ;;  %v1774_v30 = vld [vmem:[%s2303_s10] sm:$0xff]  }
 0xa45   :  { %v962_v33 = vadd.f32 %v957_v31, %v2164_v32  ;;  %v1700_v34 = vpop.f32.mrb[35].mxu1  ;;  %v1775_v31 = vld [vmem:[%s2303_s10 + $0x8] sm:$0xff]  }
 0xa4a   :  { %v1057_v35 = vpop.f32.mrb[36].mxu1 }
 0xa4b   :  { %v1064_v36 = vsel %vm2055_vm4, %v1057_v35, -1e+10  ;;  %v1711_v37 = vpop.f32.mrb[37].mxu1 }
 0xa4c   :  { %v1060_v38 = vpop.f32.mrb[38].mxu1  ;;  %v1068_v39 = vsel %vm151_vm2, %v1064_v36, -inf }
 0xa4d   :  { %1069 = vmax.xlane.f32.xlu1 %v1068_v39  ;;  %v1712_v40 = vpop.f32.mrb[39].mxu1 }
 0xa4e   :  { %v1538_v40 = vld [vmem:[%s2299_s6] ss:$0 sm:$0xff] }
 0xa5e   :  { %1089 = vrot.lane.b32.xlu1 %v2030_v11, %s1893_s25 }
 0xaa0   :  { %v1079_v41 = vpop.xlane.xlu0 %1078 }
 0xaa1   :  { %1804 = vrcp.f32 %v1079_v41 }
 0xaab   :  { %v1805_v28 = vpop.eup %1804 }
 0xaac   :  { %v1085_v32 = vmul.f32 %v1805_v28, %v1803_v25 }
 0xaae   :  { %v1087_v46 = vpack.c.bf16 %v1085_v32, %v1085_v32  ;;  %v1539_v32 = vld [vmem:[%s2300_s7] ss:$0 sm:$0xff] }
 0xada   :  { %v1070_v42 = vpop.xlane.xlu1 %1069 }
 0xadb   :  { %v1072_v43 = vsub.f32 %v1064_v36, %v1070_v42 }
 0xadd   :  { %v1075_v44 = vmul.f32 1.442695, %v1072_v43 }
 0xade   :  { %v1090_v45 = vpop.permute.xlu1 %1089 }
 0xadf   :  { %1806 = vpow2.f32 %v1075_v44  ;;  %v1095_v29 = vsel %vm278_vm5, %v1090_v45, 0 }
 0xae0   :  { %1714 = vmatpush3.bf16.msra.mxu0 %v1095_v29 }
 0xae1   :  { %1725 = vmatprep.subr.bf16.mxu0 %v1882_v0 }
 0xae3   :  { %1716 = vmatmul.mubr.msk.bf16.vlgmr.msra.gmra.mrb[32].mxu0 %vm151_vm2, %v1087_v46 }
 0xae4   :  { %1727 = vmatprep.mubr.msk.bf16.mxu0 %vm1883_vm0, %v1882_v0  ;;  %1726 = vmatpush3.bf16.msra.mxu0 %v1191_v49 }
 0xae5   :  { %1739 = vmatprep.subr.bf16.mxu0 %v1882_v0 }
 0xae9   :  { %v1807_v11 = vpop.eup %1806 }
 0xaea   :  { %v1080_v47 = vsel %vm151_vm2, %v1807_v11, 0.0 }
 0xaeb   :  { %1081 = vadd.xlane.f32.xlu0 %v1080_v47  ;;  %v1777_v47 = vld [vmem:[%s2303_s10 + $0x18] sm:$0xff]  }
 0xb01   :  { %1137 = vrot.lane.b32.xlu0 %v2033_v14, %s1893_s25 }
 0xb78   :  { %v1082_v50 = vpop.xlane.xlu0 %1081 }
 0xb79   :  { %1808 = vrcp.f32 %v1082_v50 }
 0xb7c   :  { %v1138_v51 = vpop.permute.xlu0 %1137 }
 0xb7d   :  { %v1143_v52 = vsel %vm278_vm5, %v1138_v51, 0 }
 0xb7e   :  { %1720 = vmatpush3.bf16.msra.mxu1 %v1143_v52 }
 0xb7f   :  { %1731 = vmatprep.subr.bf16.mxu1 %v1882_v0 }
 0xb83   :  { %v1809_v53 = vpop.eup %1808 }
 0xb84   :  { %v1086_v54 = vmul.f32 %v1809_v53, %v1807_v11  ;;  %v1776_v11 = vld [vmem:[%s2303_s10 + $0x10] sm:$0xff]  }
 0xb86   :  { %v1088_v14 = vpack.c.bf16 %v1086_v54, %v1086_v54 }
 0xb88   :  { %1722 = vmatmul.mubr.msk.bf16.vlgmr.msra.gmra.mrb[40].mxu1 %vm151_vm2, %v1088_v14 }
 0xb89   :  { %1735 = vmatprep.mubr.msk.bf16.mxu1 %vm1883_vm0, %v1882_v0  ;;  %1732 = vmatpush3.bf16.msra.mxu1 %v1772_v26  ;;  %v1551_v26 = vld [vmem:[%s2306_s13] ss:$0 sm:$0xff] }
 0xb8a   :  { %1733 = vmatprep.subr.bf16.mxu1 %v1882_v0 }
 0xbb6   :  { %v1131_v55 = vpop.f32.mrb[32].mxu0 }
 0xbb7   :  { %v1717_v56 = vpop.f32.mrb[33].mxu0 }
 0xbb8   :  { %v1134_v57 = vpop.f32.mrb[34].mxu0 }
 0xbb9   :  { %v1718_v58 = vpop.f32.mrb[35].mxu0 }
 0xc5b   :  { %v1179_v59 = vpop.f32.mrb[40].mxu1 }
 0xc5c   :  { %v1185_v60 = vpack.c.bf16 %v1179_v59, %v1131_v55  ;;  %v1723_v61 = vpop.f32.mrb[41].mxu1 }
 0xc5d   :  { %v1182_v62 = vpop.f32.mrb[42].mxu1 }
 0xc5e   :  { %v1724_v63 = vpop.f32.mrb[43].mxu1  ;;  %1728 = vmatmul.mubr.msk.bf16.vlgmr.msra.gmra.mrb[36].mxu0 %vm151_vm2, %v1185_v60 }
 0xc5f   :  { %1747 = vmatprep.mubr.msk.bf16.mxu0 %vm1883_vm0, %v1882_v0  ;;  %1740 = vmatpush3.bf16.msra.mxu0 %v1774_v30 }
 0xc60   :  { %1741 = vmatprep.subr.bf16.mxu0 %v1882_v0 }
 0xc63   :  { %1742 = vmatpush3.bf16.msra.mxu0 %v1775_v31 }
 0xc64   :  { %1743 = vmatprep.subr.bf16.mxu0 %v1882_v0 }
 0xc67   :  { %1744 = vmatpush3.bf16.msra.mxu0 %v1776_v11 }
 0xc68   :  { %1745 = vmatprep.subr.bf16.mxu0 %v1882_v0  ;;  %v1544_v0 = vld [vmem:[%s2304_s11] ss:$0 sm:$0xff] }
 0xc6b   :  { %1746 = vmatpush3.bf16.msra.mxu0 %v1777_v47 }
 0xd31   :  { %v1227_v1 = vpop.f32.mrb[36].mxu0 }
 0xd32   :  { %v1234_v2 = vadd.f32 %v1227_v1, %v961_v27  ;;  %v1729_v5 = vpop.f32.mrb[37].mxu0  ;;  %v1773_v27 = vld [vmem:[#allocation4 + $0x8] sm:$0xff]  }
 0xd33   :  { %v1230_v6 = vpop.f32.mrb[38].mxu0  ;;  %1734 = vmatpush3.bf16.msra.mxu1 %v1773_v27 }
 0xd34   :  { %v1236_v8 = vadd.f32 %v1234_v2, %v2013_v3  ;;  %v1235_v9 = vadd.f32 %v1230_v6, %v962_v33  ;;  %v1730_v10 = vpop.f32.mrb[39].mxu0 }
 0xd36   :  { %v1237_v12 = vadd.f32 %v1235_v9, %v2018_v4  ;;  %v1245_v13 = vadd.f32 %v1537_v7, %v1236_v8 }
 0xd38   :  { %v1249_v15 = vsel %vm92_vm1, %v1245_v13, 0.0  ;;  %v1246_v16 = vadd.f32 %v1537_v7, %v1237_v12 }
 0xd39   :  { %1250 = vadd.xlane.f32.xlu1 %v1249_v15 }
 0xd3a   :  { %v1252_v17 = vsel %vm92_vm1, %v1246_v16, 0.0 }
 0xd3b   :  { %1253 = vadd.xlane.f32.xlu0 %v1252_v17 }
 0xdc6   :  { %v1251_v18 = vpop.xlane.xlu1 %1250 }
 0xdc7   :  { %v1256_v19 = vmul.f32 0.03125, %v1251_v18 }
 0xdc8   :  { %v1254_v20 = vpop.xlane.xlu0 %1253 }
 0xdc9   :  { %v1258_v21 = vsub.f32 %v1245_v13, %v1256_v19  ;;  %v1257_v23 = vmul.f32 0.03125, %v1254_v20 }
 0xdcb   :  { %v1259_v24 = vsub.f32 %v1246_v16, %v1257_v23  ;;  %v1260_v25 = vmul.f32 %v1258_v21, %v1258_v21 }
 0xdcd   :  { %v1262_v3 = vsel %vm92_vm1, %v1260_v25, 0.0  ;;  %v1261_v22 = vmul.f32 %v1259_v24, %v1259_v24 }
 0xdce   :  { %1263 = vadd.xlane.f32.xlu1 %v1262_v3  ;;  %v1550_v3 = vld [vmem:[%s2305_s12] ss:$0 sm:$0xff] }
 0xdcf   :  { %v1265_v4 = vsel %vm92_vm1, %v1261_v22, 0.0 }
 0xdd0   :  { %1266 = vadd.xlane.f32.xlu0 %v1265_v4 }
 0xe5b   :  { %v1264_v33 = vpop.xlane.xlu1 %1263 }
 0xe5c   :  { %v1268_v34 = vmul.f32 0.03125, %v1264_v33 }
 0xe5d   :  { %v1267_v35 = vpop.xlane.xlu0 %1266 }
 0xe5e   :  { %v1270_v36 = vadd.f32 1e-05, %v1268_v34  ;;  %v1269_v37 = vmul.f32 0.03125, %v1267_v35 }
 0xe60   :  { %1810 = vrsqrt.f32 %v1270_v36  ;;  %v1271_v38 = vadd.f32 1e-05, %v1269_v37 }
 0xe62   :  { %1812 = vrsqrt.f32 %v1271_v38 }
 0xe6a   :  { %v1811_v39 = vpop.eup %1810 }
 0xe6b   :  { %v1274_v41 = vmul.f32 %v1811_v39, %v1258_v21 }
 0xe6c   :  { %v1813_v28 = vpop.eup %1812 }
 0xe6d   :  { %v1282_v42 = vmul.f32 %v1538_v40, %v1274_v41  ;;  %v1275_v43 = vmul.f32 %v1813_v28, %v1259_v24 }
 0xe6f   :  { %v1283_v44 = vmul.f32 %v1538_v40, %v1275_v43  ;;  %v1290_v45 = vadd.f32 %v1539_v32, %v1282_v42 }
 0xe71   :  { %v1291_v29 = vadd.f32 %v1539_v32, %v1283_v44 }
 0xe73   :  { %v1292_v46 = vpack.c.bf16 %v1291_v29, %v1290_v45 }
 0xe75   :  { %1736 = vmatmul.mubr.msk.bf16.vlgmr.msra.gmra.mrb[44].mxu1 %vm92_vm1, %v1292_v46 }
 0xf48   :  { %v1353_v49 = vpop.f32.mrb[44].mxu1 }
 0xf49   :  { %v1354_v50 = vadd.f32 %v1540_v48, %v1353_v49  ;;  %v1737_v51 = vpop.f32.mrb[45].mxu1 }
 0xf4a   :  { %v1356_v52 = vpop.f32.mrb[46].mxu1 }
 0xf4b   :  { %v1357_v53 = vadd.f32 %v1540_v48, %v1356_v52  ;;  %v1738_v54 = vpop.f32.mrb[47].mxu1  ;;  %v1360_v14 = vmax.f32 %v1354_v50, 0.0 }
 0xf4d   :  { %v1361_v55 = vmax.f32 %v1357_v53, 0.0 }
 0xf4f   :  { %v1362_v56 = vpack.c.bf16 %v1361_v55, %v1360_v14 }
 0xf51   :  { %1748 = vmatmul.mubr.msk.bf16.vlgmr.msra.gmra.mrb[40].mxu0 %vm1402_vm6, %v1362_v56 }
0x1024   :  { %v1440_v57 = vpop.f32.mrb[40].mxu0 }
0x1025   :  { %v1441_v58 = vadd.f32 %v1544_v0, %v1440_v57  ;;  %v1749_v59 = vpop.f32.mrb[41].mxu0 }
0x1026   :  { %v1443_v60 = vpop.f32.mrb[42].mxu0 }
0x1027   :  { %v1444_v61 = vadd.f32 %v1544_v0, %v1443_v60  ;;  %v1750_v62 = vpop.f32.mrb[43].mxu0  ;;  %v1447_v63 = vadd.f32 %v1441_v58, %v1290_v45 }
0x1029   :  { %v1451_v1 = vsel %vm92_vm1, %v1447_v63, 0.0  ;;  %v1448_v2 = vadd.f32 %v1444_v61, %v1291_v29 }
0x102a   :  { %1452 = vadd.xlane.f32.xlu1 %v1451_v1 }
0x102b   :  { %v1454_v5 = vsel %vm92_vm1, %v1448_v2, 0.0 }
0x102c   :  { %1455 = vadd.xlane.f32.xlu0 %v1454_v5 }
0x10b7   :  { %v1453_v6 = vpop.xlane.xlu1 %1452 }
0x10b8   :  { %v1457_v7 = vmul.f32 0.03125, %v1453_v6 }
0x10b9   :  { %v1456_v8 = vpop.xlane.xlu0 %1455 }
0x10ba   :  { %v1459_v9 = vsub.f32 %v1447_v63, %v1457_v7  ;;  %v1458_v10 = vmul.f32 0.03125, %v1456_v8 }
0x10bc   :  { %v1460_v12 = vsub.f32 %v1448_v2, %v1458_v10  ;;  %v1461_v13 = vmul.f32 %v1459_v9, %v1459_v9 }
0x10be   :  { %v1463_v15 = vsel %vm92_vm1, %v1461_v13, 0.0  ;;  %v1462_v16 = vmul.f32 %v1460_v12, %v1460_v12 }
0x10bf   :  { %1464 = vadd.xlane.f32.xlu1 %v1463_v15 }
0x10c0   :  { %v1466_v17 = vsel %vm92_vm1, %v1462_v16, 0.0 }
0x10c1   :  { %1467 = vadd.xlane.f32.xlu0 %v1466_v17 }
0x114c   :  { %v1465_v18 = vpop.xlane.xlu1 %1464 }
0x114d   :  { %v1469_v19 = vmul.f32 0.03125, %v1465_v18 }
0x114e   :  { %v1468_v20 = vpop.xlane.xlu0 %1467 }
0x114f   :  { %v1471_v21 = vadd.f32 1e-05, %v1469_v19  ;;  %v1470_v23 = vmul.f32 0.03125, %v1468_v20 }
0x1151   :  { %1814 = vrsqrt.f32 %v1471_v21  ;;  %v1472_v24 = vadd.f32 1e-05, %v1470_v23 }
0x1153   :  { %1816 = vrsqrt.f32 %v1472_v24 }
0x115b   :  { %v1815_v25 = vpop.eup %1814 }
0x115c   :  { %v1475_v22 = vmul.f32 %v1815_v25, %v1459_v9 }
0x115d   :  { %v1817_v4 = vpop.eup %1816 }
0x115e   :  { %v1483_v27 = vmul.f32 %v1550_v3, %v1475_v22  ;;  %v1476_v30 = vmul.f32 %v1817_v4, %v1460_v12 }
0x1160   :  { %v1484_v31 = vmul.f32 %v1550_v3, %v1476_v30  ;;  %v1491_v33 = vadd.f32 %v1551_v26, %v1483_v27 }
0x1162   :  { %v1492_v34 = vadd.f32 %v1551_v26, %v1484_v31  ;;  %1493 = vst.msk [vmem:[#allocation7] sm:$0xff] %vm92_vm1, %v1491_v33 }
0x1164   :  { %1494 = vst.msk [vmem:[#allocation7 + $0x8] sm:$0xff] %vm92_vm1, %v1492_v34 }
0x1165   :  { %1861 = shalt.err (!%p1858_p1)
}
0x1166   :  { %s1862_s25 = scalar_lea.hbm %s2307_s14, 256 }
0x1167   :  { %p1863_p2 = scmp.ne.s32.totalorder %s2307_s14, %s1862_s25  ;;  %p1866_p3 = scmp.lt.u32.totalorder %s1862_s25, %s2307_s14 }
0x1169   :  { %p1868_p4 = pnand %p1866_p3, %p1863_p2 }
0x116b   :  { %1871 = shalt.err (!%p1868_p4)
}
0x116c   :  { %s1895_s5 = smov 128   ;;  %s1896_s1 = smov 8  }
0x116d   :  { %1506 = dma.vmem_to_hbm [thread:$0]  %s1501_s23, 256, %s2307_s14, [#allocation6], %s1895_s5, %s1895_s5, %s1896_s1  }
0x116e   :  { %1876 = dma.done.wait [#allocation6], 256  }
0x116f   :  { %1877 = vsyncadd [#allocation6], 4294967040 }
0x1170   :  { %1510 = vsyncpa [#allocation5], 1 }
0x1171   :  { %1511 = vsyncpa [#allocation6], 1 }

</bundles_post_ra>
